<compile_context>
chip_gen: v6e
topology: v6e:2x2x1
jax: 0.10.0
libtpu: 0.0.40
codegen_flags: <defaults>
</compile_context>

<pallas_src>
import functools

import jax
import jax.numpy as jnp
from jax import lax
from jax.experimental import pallas as pl
from jax.experimental.pallas import tpu as pltpu


def _round_up(x, m):
    return (x + m - 1) // m * m


def _largest_divisor_leq(n, cap):
    cap = max(1, min(n, cap))
    for d in range(cap, 0, -1):
        if n % d == 0:
            return d
    return 1


# -----------------------------------------------------------------------------
# Generation-aware VMEM budget (v7x: 64 MiB physical, v5e/v6e: 128 MiB).
# -----------------------------------------------------------------------------
_VMEM_CAP = None


def _vmem_capacity_bytes():
    global _VMEM_CAP
    if _VMEM_CAP is None:
        cap = 128 * 1024 * 1024
        try:
            info = pltpu.get_tpu_info()
            for name in ("vmem_capacity_bytes", "vmem_bytes", "vmem_size_bytes"):
                v = getattr(info, name, None)
                if v:
                    cap = int(v)
                    break
        except Exception:
            pass
        _VMEM_CAP = cap
    return _VMEM_CAP


def _vmem_limit_bytes():
    # Leave ~16 MiB headroom for Mosaic internal scratch / DMA buffers.
    return max(32 * 1024 * 1024, _vmem_capacity_bytes() - 16 * 1024 * 1024)


def _row_tile_cap():
    # 128 MiB parts (v5e/v6e) comfortably fit tm=1024 double-buffered output
    # tiles; keep 512 on 64 MiB (v7x) parts.
    return 1024 if _vmem_capacity_bytes() >= 100 * 1024 * 1024 else 512


# -----------------------------------------------------------------------------
# Optional single-buffering of loop-invariant (constant index_map) operands.
# Probed once (value-checked) so older JAX versions silently fall back to
# default double-buffering instead of failing to compile.
# -----------------------------------------------------------------------------
_BUFFERED1_OK = None


def _buffered1_supported():
    global _BUFFERED1_OK
    if _BUFFERED1_OK is None:
        try:
            def _k(a_ref, w_ref, o_ref):
                o_ref[...] = a_ref[...] + w_ref[...]

            a = jnp.arange(16 * 128, dtype=jnp.float32).reshape(16, 128)
            w = jnp.ones((8, 128), jnp.float32)
            fn = pl.pallas_call(
                _k,
                out_shape=jax.ShapeDtypeStruct((16, 128), jnp.float32),
                grid=(2,),
                in_specs=[
                    pl.BlockSpec((8, 128), lambda i: (i, 0)),
                    pl.BlockSpec((8, 128), lambda i: (0, 0),
                                 pipeline_mode=pl.Buffered(1)),
                ],
                out_specs=pl.BlockSpec((8, 128), lambda i: (i, 0)),
            )
            out = jax.block_until_ready(fn(a, w))
            _BUFFERED1_OK = bool(jnp.max(jnp.abs(out - (a + 1.0))) == 0.0)
        except Exception:  # pl.Buffered(1) not supported by this JAX version.
            _BUFFERED1_OK = False
    return _BUFFERED1_OK


def _const_spec(shape):
    """BlockSpec for a loop-invariant operand (block index is always 0).

    Single-buffered when supported: the block is DMA'd once and never
    re-fetched, halving its VMEM footprint."""
    index_map = lambda *_: (0,) * len(shape)
    if _buffered1_supported():
        return pl.BlockSpec(shape, index_map, pipeline_mode=pl.Buffered(1))
    return pl.BlockSpec(shape, index_map)


# -----------------------------------------------------------------------------
# Kernels
# -----------------------------------------------------------------------------
def _pregate_kernel(xi_ref, xg_ref, w1x_ref, w1g_ref, b1_ref, wih_ref, bg_ref,
                    out_ref):
    # z_t = relu(x_t @ W1 + b1); W1 split into inputs/goal halves.
    z = jnp.dot(xi_ref[...], w1x_ref[...], preferred_element_type=jnp.float32)
    z = z + jnp.dot(xg_ref[...], w1g_ref[...],
                    preferred_element_type=jnp.float32)
    z = jnp.maximum(z + b1_ref[...], 0.0)
    # Input-side gate pre-activations: z_t @ W_ih + (b_ih + b_hh).
    g = (jnp.dot(z.astype(wih_ref.dtype), wih_ref[...],
                 preferred_element_type=jnp.float32)
         + bg_ref[...])
    out_ref[...] = g.astype(out_ref.dtype)


def _lstm_kernel(g_ref, h0_ref, c0_ref, whh_ref,
                 hseq_ref, hfin_ref, cfin_ref, *, hidden, tc, unroll):
    blk = pl.program_id(0)

    # (h, c) live in the constant-index output blocks -> VMEM resident across
    # the whole grid; initialize them once.
    @pl.when(blk == 0)
    def _():
        hfin_ref[...] = h0_ref[...]
        cfin_ref[...] = c0_ref[...]

    H = hidden          # multiple of 128 -> lane-aligned PyTorch i,f,g,o slices
    whh = whh_ref[...]  # loop-invariant; read once per block

    def step(s, carry):
        h_prev, c_prev = carry
        gates = g_ref[s].astype(jnp.float32) + jnp.dot(
            h_prev.astype(whh.dtype), whh, preferred_element_type=jnp.float32)
        i_g = jax.nn.sigmoid(gates[:, 0 * H:1 * H])
        f_g = jax.nn.sigmoid(gates[:, 1 * H:2 * H])
        g_g = jnp.tanh(gates[:, 2 * H:3 * H])
        o_g = jax.nn.sigmoid(gates[:, 3 * H:4 * H])
        c_new = f_g * c_prev + i_g * g_g
        h_new = o_g * jnp.tanh(c_new)
        hseq_ref[s] = h_new.astype(hseq_ref.dtype)
        return h_new, c_new

    # TODO(synk): for small Np and Hp <= 512 keep W_hh resident in MXU weight
    # registers across all Tc steps via pltpu.matmul_push_rhs/matmul_acc_lhs.
    h_fin, c_fin = lax.fori_loop(0, tc, step,
                                 (hfin_ref[...], cfin_ref[...]),
                                 unroll=unroll)
    hfin_ref[...] = h_fin
    cfin_ref[...] = c_fin


def _head_kernel(h_ref, w_ref, b_ref, out_ref):
    out_ref[...] = (
        jnp.dot(h_ref[...].astype(w_ref.dtype), w_ref[...],
                preferred_element_type=jnp.float32)
        + b_ref[...]).astype(out_ref.dtype)


# -----------------------------------------------------------------------------
# pallas_call wrappers
# -----------------------------------------------------------------------------
def _pregate_call(xi, xg, w1x, w1g, b1, wih, bg, *, tm, out_dtype):
    mp, feat = xi.shape
    d = xg.shape[1]
    hp = w1x.shape[1]
    g4 = wih.shape[1]
    row = lambda i: (i, 0)
    # TODO(synk): for H >= ~1024 add an output-column grid axis (wih block
    # (Hp, tn)) so the resident W_ih tile stays inside v7x's 64 MiB VMEM.
    return pl.pallas_call(
        _pregate_kernel,
        out_shape=jax.ShapeDtypeStruct((mp, g4), out_dtype),
        grid=(mp // tm,),
        in_specs=[
            pl.BlockSpec((tm, feat), row),
            pl.BlockSpec((tm, d), row),
            _const_spec((feat, hp)),
            _const_spec((d, hp)),
            _const_spec((1, hp)),
            _const_spec((hp, g4)),     # big loop-invariant weight
            _const_spec((1, g4)),
        ],
        out_specs=pl.BlockSpec((tm, g4), row),
        compiler_params=pltpu.CompilerParams(
            dimension_semantics=("parallel",),
            vmem_limit_bytes=_vmem_limit_bytes()),
    )(xi, xg, w1x, w1g, b1, wih, bg)


def _lstm_call(gates_seq, h0, c0, whh, *, tc, unroll, hseq_dtype):
    T, np_, g4 = gates_seq.shape
    hp = h0.shape[1]
    blk3 = lambda b: (b, 0, 0)
    # TODO(synk): for Np >= ~256 on v7x, split the Np rows across the two
    # TensorCores (pl.core_map) since the time axis cannot be parallelized.
    return pl.pallas_call(
        functools.partial(_lstm_kernel, hidden=hp, tc=tc, unroll=unroll),
        out_shape=(
            jax.ShapeDtypeStruct((T, np_, hp), hseq_dtype),  # all h_t
            jax.ShapeDtypeStruct((np_, hp), jnp.float32),    # final h
            jax.ShapeDtypeStruct((np_, hp), jnp.float32),    # final c
        ),
        grid=(T // tc,),
        in_specs=[
            pl.BlockSpec((tc, np_, g4), blk3),
            _const_spec((np_, hp)),
            _const_spec((np_, hp)),
            _const_spec((hp, g4)),     # W_hh: loop-invariant weight
        ],
        out_specs=(
            pl.BlockSpec((tc, np_, hp), blk3),
            _const_spec((np_, hp)),
            _const_spec((np_, hp)),
        ),
        compiler_params=pltpu.CompilerParams(
            dimension_semantics=("arbitrary",),   # sequential recurrence
            vmem_limit_bytes=_vmem_limit_bytes()),
    )(gates_seq, h0, c0, whh)


def _head_call(h_flat, w_head, b_head, *, tm):
    mp, hp = h_flat.shape
    p = w_head.shape[1]
    row = lambda i: (i, 0)
    return pl.pallas_call(
        _head_kernel,
        out_shape=jax.ShapeDtypeStruct((mp, p), jnp.float32),
        grid=(mp // tm,),
        in_specs=[
            pl.BlockSpec((tm, hp), row),
            _const_spec((hp, p)),
            _const_spec((1, p)),
        ],
        out_specs=pl.BlockSpec((tm, p), row),
        compiler_params=pltpu.CompilerParams(
            dimension_semantics=("parallel",),
            vmem_limit_bytes=_vmem_limit_bytes()),
    )(h_flat, w_head, b_head)


# -----------------------------------------------------------------------------
# Forward
# -----------------------------------------------------------------------------
def feudal_worker_forward(inputs, goal, worker_hidden, params,
                          *, compute_dtype=jnp.bfloat16):
    """JAX/Pallas equivalent of Feudal_WorkerAgent.forward.

    inputs: (T, B, A, feat) f32, goal: (T, B, A, state_dim_d) f32
    worker_hidden: (h, c), each (1, B*A, H) f32
    params: dict of pre-transposed (in, out) weights (see _init_params)
    compute_dtype: MXU-operand dtype for activations/weights and the large HBM
      intermediates.  bf16 (default) gives ~4-8x MXU throughput and halves
      weight/intermediate traffic on v5e/v6e/v7x; accumulation, biases, the
      nonlinearities and the LSTM state always stay f32.
    """
    T, B, A, feat = inputs.shape
    d = goal.shape[-1]
    N = B * A
    H = params["w1"].shape[1]
    n_actions = params["wa"].shape[1]
    n_head = n_actions + 2

    # Padded sizes: lanes (last dim) -> 128, rows (sublanes) -> 8.
    Np = _round_up(N, 8)
    Hp = _round_up(H, 128)
    P = _round_up(n_head, 128)
    M = T * Np                        # rows of the two batched GEMMs

    # Row tile that divides M exactly (no wrapper-side slice/pad copies of the
    # big intermediates) and time block for the recurrence.
    k_rows = _largest_divisor_leq(T, max(1, _row_tile_cap() // Np))
    tm = Np * k_rows
    tc = _largest_divisor_leq(T, 32)
    unroll = tc <= 8

    cdt = compute_dtype
    f32 = jnp.float32

    # --- activations: (T, B, A, .) -> (T*Np, .), zero-padded rows -------------
    xi = inputs.reshape(T, N, feat)
    xg = goal.reshape(T, N, d)
    if Np != N:
        xi = jnp.pad(xi, ((0, 0), (0, Np - N), (0, 0)))
        xg = jnp.pad(xg, ((0, 0), (0, Np - N), (0, 0)))
    xi = xi.reshape(M, feat).astype(cdt)
    xg = xg.reshape(M, d).astype(cdt)

    h0 = jnp.pad(worker_hidden[0].reshape(N, H),
                 ((0, Np - N), (0, Hp - H))).astype(f32)
    c0 = jnp.pad(worker_hidden[1].reshape(N, H),
                 ((0, Np - N), (0, Hp - H))).astype(f32)

    # --- parameters: pad per gate, fold biases, fuse heads ---------------------
    def pad_gates(w):  # (..., 4H) -> (..., 4Hp): zero-pad each i/f/g/o block
        gi, gf, gg, go = jnp.split(w, 4, axis=-1)
        padc = ((0, 0),) * (w.ndim - 1) + ((0, Hp - H),)
        return jnp.concatenate(
            [jnp.pad(gi, padc), jnp.pad(gf, padc),
             jnp.pad(gg, padc), jnp.pad(go, padc)], axis=-1)

    w1x = jnp.pad(params["w1"][:feat], ((0, 0), (0, Hp - H))).astype(cdt)
    w1g = jnp.pad(params["w1"][feat:], ((0, 0), (0, Hp - H))).astype(cdt)
    b1 = jnp.pad(params["b1"], ((0, 0), (0, Hp - H))).astype(f32)

    # TODO(synk): on v7x the MXU also takes fp8 weights; quantizing wih/whh/
    # w_head (bf16 activations, f32 accumulation) is a further ~2x but needs
    # explicit accuracy validation.
    wih = pad_gates(jnp.pad(params["wih"], ((0, Hp - H), (0, 0)))).astype(cdt)
    whh = pad_gates(jnp.pad(params["whh"], ((0, Hp - H), (0, 0)))).astype(cdt)
    bg = pad_gates(params["bih"] + params["bhh"]).astype(f32)  # folded biases

    w_head = jnp.concatenate([params["wa"], params["wc1"], params["wc2"]],
                             axis=1)
    w_head = jnp.pad(w_head, ((0, Hp - H), (0, P - n_head))).astype(cdt)
    b_head = jnp.concatenate([params["ba"], params["bc1"], params["bc2"]],
                             axis=1)
    b_head = jnp.pad(b_head, ((0, 0), (0, P - n_head))).astype(f32)

    # --- 1) batched, h-independent GEMMs (hoisted out of the recurrence) ------
    gates_seq = _pregate_call(xi, xg, w1x, w1g, b1, wih, bg,
                              tm=tm, out_dtype=cdt)
    gates_seq = gates_seq.reshape(T, Np, 4 * Hp)

    # --- 2) sequential LSTM recurrence, time-blocked ---------------------------
    h_seq, h_fin, c_fin = _lstm_call(gates_seq, h0, c0, whh,
                                     tc=tc, unroll=unroll, hseq_dtype=cdt)

    # --- 3) batched fused actor/critic heads -----------------------------------
    head = _head_call(h_seq.reshape(M, Hp), w_head, b_head, tm=tm)
    head = head.reshape(T, Np, P)[:, :N, :]

    logits = head[..., :n_actions].reshape(T, B, A, n_actions)
    v1 = head[..., n_actions].reshape(T, B, A)
    v2 = head[..., n_actions + 1].reshape(T, B, A)
    v = 0.5 * (v1 + v2)
    h = h_fin[:N, :H].reshape(1, N, H)
    c = c_fin[:N, :H].reshape(1, N, H)
    return logits, v, (v1, v2), (h, c)


# -----------------------------------------------------------------------------
# Synthetic params + pure-JAX reference (for an in-script correctness check)
# -----------------------------------------------------------------------------
def _init_params(key, input_shape, state_dim_d, hidden_dim, n_actions):
    """Deterministic synthetic parameters, stored pre-transposed as (in, out)."""
    Din = input_shape + state_dim_d
    H = hidden_dim
    ks = jax.random.split(key, 12)
    s = 0.1
    return {
        "w1":  s * jax.random.normal(ks[0], (Din, H), jnp.float32),
        "b1":  s * jax.random.normal(ks[1], (1, H), jnp.float32),
        "wih": s * jax.random.normal(ks[2], (H, 4 * H), jnp.float32),
        "whh": s * jax.random.normal(ks[3], (H, 4 * H), jnp.float32),
        "bih": s * jax.random.normal(ks[4], (1, 4 * H), jnp.float32),
        "bhh": s * jax.random.normal(ks[5], (1, 4 * H), jnp.float32),
        "wa":  s * jax.random.normal(ks[6], (H, n_actions), jnp.float32),
        "ba":  s * jax.random.normal(ks[7], (1, n_actions), jnp.float32),
        "wc1": s * jax.random.normal(ks[8], (H, 1), jnp.float32),
        "bc1": s * jax.random.normal(ks[9], (1, 1), jnp.float32),
        "wc2": s * jax.random.normal(ks[10], (H, 1), jnp.float32),
        "bc2": s * jax.random.normal(ks[11], (1, 1), jnp.float32),
    }


def _reference_forward(inputs, goal, worker_hidden, params):
    T, B, A, feat = inputs.shape
    d = goal.shape[-1]
    N = B * A
    na = params["wa"].shape[1]
    hi = jax.lax.Precision.HIGHEST

    x = jnp.concatenate([inputs, goal], axis=-1).reshape(T, N, feat + d)
    z = jax.nn.relu(jnp.dot(x, params["w1"], precision=hi) + params["b1"])

    def step(carry, zt):
        h, c = carry
        gates = (jnp.dot(zt, params["wih"], precision=hi) + params["bih"]
                 + jnp.dot(h, params["whh"], precision=hi) + params["bhh"])
        i, f, g, o = jnp.split(gates, 4, axis=-1)
        c = jax.nn.sigmoid(f) * c + jax.nn.sigmoid(i) * jnp.tanh(g)
        h = jax.nn.sigmoid(o) * jnp.tanh(c)
        return (h, c), h

    (h, c), out = jax.lax.scan(step,
                               (worker_hidden[0][0], worker_hidden[1][0]), z)
    logits = (jnp.dot(out, params["wa"], precision=hi)
              + params["ba"]).reshape(T, B, A, na)
    v1 = (jnp.dot(out, params["wc1"], precision=hi)
          + params["bc1"])[..., 0].reshape(T, B, A)
    v2 = (jnp.dot(out, params["wc2"], precision=hi)
          + params["bc2"])[..., 0].reshape(T, B, A)
    return logits, 0.5 * (v1 + v2), (v1, v2), (h[None], c[None])


if __name__ == "__main__":
    T, B, A = 5, 2, 3
    feat = 10
    state_dim_d = 6
    hidden_dim = 32
    n_actions = 8
    N = B * A

    key = jax.random.PRNGKey(0)
    k_in, k_goal, k_par = jax.random.split(key, 3)

    inputs = jax.random.normal(k_in, (T, B, A, feat), jnp.float32)
    goal = jax.random.normal(k_goal, (T, B, A, state_dim_d), jnp.float32)
    params = _init_params(k_par, feat, state_dim_d, hidden_dim, n_actions)

    # init_hidden equivalent
    h0 = jnp.zeros((1, N, hidden_dim), jnp.float32)
    c0 = jnp.zeros((1, N, hidden_dim), jnp.float32)

    # Force the Buffered(1) probe and the TPU-info query outside the jit trace.
    _buffered1_supported()
    _vmem_capacity_bytes()

    fwd = jax.jit(feudal_worker_forward, static_argnames=("compute_dtype",))

    r_logits, r_v, (r_v1, r_v2), (r_h, r_c) = _reference_forward(
        inputs, goal, (h0, c0), params)

    def check(outs, rtol, atol):
        logits, v, (v1, v2), (h, c) = outs
        assert logits.shape == (T, B, A, n_actions)
        assert v.shape == (T, B, A)
        assert v1.shape == (T, B, A) and v2.shape == (T, B, A)
        assert h.shape == (1, N, hidden_dim) and c.shape == (1, N, hidden_dim)
        for got, ref in ((logits, r_logits), (v, r_v), (v1, r_v1),
                         (v2, r_v2), (h, r_h), (c, r_c)):
            err = float(jnp.max(jnp.abs(got - ref)))
            assert jnp.allclose(got, ref, rtol=rtol, atol=atol), err

    # f32 MXU operands: tight structural correctness check.
    out_f32 = fwd(inputs, goal, (h0, c0), params, compute_dtype=jnp.float32)
    jax.block_until_ready(out_f32)
    check(out_f32, rtol=2e-2, atol=5e-3)

    # bf16 MXU operands (default fast path): looser tolerance for rounding.
    out_bf16 = fwd(inputs, goal, (h0, c0), params)
    jax.block_until_ready(out_bf16)
    check(out_bf16, rtol=3e-2, atol=1.5e-2)

    print("KERNEL_OK")
</pallas_src>

<mosaic_0001>
module attributes {stable_mosaic.version = 11 : i64} {
  func.func @_k(%arg0: i32, %arg1: memref<8x128xf32, #tpu.memory_space<vmem>>, %arg2: memref<8x128xf32, #tpu.memory_space<vmem>>, %arg3: memref<8x128xf32, #tpu.memory_space<vmem>>) attributes {dimension_semantics = [#tpu.dimension_semantics<arbitrary>], iteration_bounds = array<i64: 2>, scalar_prefetch = 0 : i64, scratch_operands = 0 : i64, tpu.core_type = #tpu.core_type<tc>, window_params = [{transform_indices = @transform_0, window_bounds = array<i64: 8, 128>}, {pipeline_mode = #tpu.pipeline_mode<synchronous>, transform_indices = @transform_1, window_bounds = array<i64: 8, 128>}, {transform_indices = @transform_2, window_bounds = array<i64: 8, 128>}]} {
    %c0 = arith.constant 0 : index
    %c0_0 = arith.constant 0 : index
    %0 = vector.load %arg1[%c0, %c0_0] : memref<8x128xf32, #tpu.memory_space<vmem>>, vector<8x128xf32>
    %c0_1 = arith.constant 0 : index
    %c0_2 = arith.constant 0 : index
    %1 = vector.load %arg2[%c0_1, %c0_2] : memref<8x128xf32, #tpu.memory_space<vmem>>, vector<8x128xf32>
    %2 = arith.addf %0, %1 : vector<8x128xf32>
    %c0_3 = arith.constant 0 : index
    %c0_4 = arith.constant 0 : index
    %3 = vector.load %arg3[%c0_3, %c0_4] : memref<8x128xf32, #tpu.memory_space<vmem>>, vector<8x128xf32>
    tpu.vector_store %arg3[%c0_3, %c0_4], %2 {strides = array<i32>} : memref<8x128xf32, #tpu.memory_space<vmem>>, vector<8x128xf32>,
    return
  }
  func.func @transform_0(%arg0: i32) -> (i32, i32) {
    %c0_i32 = arith.constant 0 : i32
    %c0_i32_0 = arith.constant 0 : i32
    return %arg0, %c0_i32 : i32, i32
  }
  func.func @transform_1(%arg0: i32) -> (i32, i32) {
    %c0_i32 = arith.constant 0 : i32
    %c0_i32_0 = arith.constant 0 : i32
    %c0_i32_1 = arith.constant 0 : i32
    return %c0_i32, %c0_i32_0 : i32, i32
  }
  func.func @transform_2(%arg0: i32) -> (i32, i32) {
    %c0_i32 = arith.constant 0 : i32
    %c0_i32_0 = arith.constant 0 : i32
    return %arg0, %c0_i32 : i32, i32
  }
}

module attributes {stable_mosaic.version = 11 : i64} {
  func.func @_pregate_kernel(%arg0: i32, %arg1: memref<40x10xf32, #tpu.memory_space<vmem>>, %arg2: memref<40x6xf32, #tpu.memory_space<vmem>>, %arg3: memref<10x128xf32, #tpu.memory_space<vmem>>, %arg4: memref<6x128xf32, #tpu.memory_space<vmem>>, %arg5: memref<1x128xf32, #tpu.memory_space<vmem>>, %arg6: memref<128x512xf32, #tpu.memory_space<vmem>>, %arg7: memref<1x512xf32, #tpu.memory_space<vmem>>, %arg8: memref<40x512xf32, #tpu.memory_space<vmem>>) attributes {dimension_semantics = [#tpu.dimension_semantics<parallel>], iteration_bounds = array<i64: 1>, scalar_prefetch = 0 : i64, scratch_operands = 0 : i64, tpu.core_type = #tpu.core_type<tc>, window_params = [{transform_indices = @transform_0, window_bounds = array<i64: 40, 10>}, {transform_indices = @transform_1, window_bounds = array<i64: 40, 6>}, {pipeline_mode = #tpu.pipeline_mode<synchronous>, transform_indices = @transform_2, window_bounds = array<i64: 10, 128>}, {pipeline_mode = #tpu.pipeline_mode<synchronous>, transform_indices = @transform_3, window_bounds = array<i64: 6, 128>}, {pipeline_mode = #tpu.pipeline_mode<synchronous>, transform_indices = @transform_4, window_bounds = array<i64: 1, 128>}, {pipeline_mode = #tpu.pipeline_mode<synchronous>, transform_indices = @transform_5, window_bounds = array<i64: 128, 512>}, {pipeline_mode = #tpu.pipeline_mode<synchronous>, transform_indices = @transform_6, window_bounds = array<i64: 1, 512>}, {transform_indices = @transform_7, window_bounds = array<i64: 40, 512>}]} {
    %c0 = arith.constant 0 : index
    %c0_0 = arith.constant 0 : index
    %0 = vector.load %arg1[%c0, %c0_0] : memref<40x10xf32, #tpu.memory_space<vmem>>, vector<40x10xf32>
    %c0_1 = arith.constant 0 : index
    %c0_2 = arith.constant 0 : index
    %1 = vector.load %arg3[%c0_1, %c0_2] : memref<10x128xf32, #tpu.memory_space<vmem>>, vector<10x128xf32>
    %cst = arith.constant dense<0.000000e+00> : vector<40x128xf32>
    %2 = tpu.matmul %0, %1, %cst {dimension_numbers = #tpu.dot_dimension_numbers<[1], [0], [0], [1], [0, 0, 1, 1], [], []>} : vector<40x10xf32>, vector<10x128xf32>, vector<40x128xf32> -> vector<40x128xf32>
    %c0_3 = arith.constant 0 : index
    %c0_4 = arith.constant 0 : index
    %3 = vector.load %arg2[%c0_3, %c0_4] : memref<40x6xf32, #tpu.memory_space<vmem>>, vector<40x6xf32>
    %c0_5 = arith.constant 0 : index
    %c0_6 = arith.constant 0 : index
    %4 = vector.load %arg4[%c0_5, %c0_6] : memref<6x128xf32, #tpu.memory_space<vmem>>, vector<6x128xf32>
    %cst_7 = arith.constant dense<0.000000e+00> : vector<40x128xf32>
    %5 = tpu.matmul %3, %4, %cst_7 {dimension_numbers = #tpu.dot_dimension_numbers<[1], [0], [0], [1], [0, 0, 1, 1], [], []>} : vector<40x6xf32>, vector<6x128xf32>, vector<40x128xf32> -> vector<40x128xf32>
    %6 = arith.addf %2, %5 : vector<40x128xf32>
    %c0_8 = arith.constant 0 : index
    %c0_9 = arith.constant 0 : index
    %7 = vector.load %arg5[%c0_8, %c0_9] : memref<1x128xf32, #tpu.memory_space<vmem>>, vector<1x128xf32>
    %8 = vector.broadcast %7 : vector<1x128xf32> to vector<40x128xf32>
    %9 = arith.addf %6, %8 : vector<40x128xf32>
    %cst_10 = arith.constant 0.000000e+00 : f32
    %10 = vector.broadcast %cst_10 : f32 to vector<40x128xf32>
    %11 = arith.maximumf %9, %10 : vector<40x128xf32>
    %c0_11 = arith.constant 0 : index
    %c0_12 = arith.constant 0 : index
    %12 = vector.load %arg6[%c0_11, %c0_12] : memref<128x512xf32, #tpu.memory_space<vmem>>, vector<128x512xf32>
    %cst_13 = arith.constant dense<0.000000e+00> : vector<40x512xf32>
    %13 = tpu.matmul %11, %12, %cst_13 {dimension_numbers = #tpu.dot_dimension_numbers<[1], [0], [0], [1], [0, 0, 1, 1], [], []>} : vector<40x128xf32>, vector<128x512xf32>, vector<40x512xf32> -> vector<40x512xf32>
    %c0_14 = arith.constant 0 : index
    %c0_15 = arith.constant 0 : index
    %14 = vector.load %arg7[%c0_14, %c0_15] : memref<1x512xf32, #tpu.memory_space<vmem>>, vector<1x512xf32>
    %15 = vector.broadcast %14 : vector<1x512xf32> to vector<40x512xf32>
    %16 = arith.addf %13, %15 : vector<40x512xf32>
    %c0_16 = arith.constant 0 : index
    %c0_17 = arith.constant 0 : index
    %17 = vector.load %arg8[%c0_16, %c0_17] : memref<40x512xf32, #tpu.memory_space<vmem>>, vector<40x512xf32>
    tpu.vector_store %arg8[%c0_16, %c0_17], %16 {strides = array<i32>} : memref<40x512xf32, #tpu.memory_space<vmem>>, vector<40x512xf32>,
    return
  }
  func.func @transform_0(%arg0: i32) -> (i32, i32) {
    %c0_i32 = arith.constant 0 : i32
    %c0_i32_0 = arith.constant 0 : i32
    return %arg0, %c0_i32 : i32, i32
  }
  func.func @transform_1(%arg0: i32) -> (i32, i32) {
    %c0_i32 = arith.constant 0 : i32
    %c0_i32_0 = arith.constant 0 : i32
    return %arg0, %c0_i32 : i32, i32
  }
  func.func @transform_2(%arg0: i32) -> (i32, i32) {
    %c0_i32 = arith.constant 0 : i32
    %c0_i32_0 = arith.constant 0 : i32
    %c0_i32_1 = arith.constant 0 : i32
    return %c0_i32, %c0_i32_0 : i32, i32
  }
  func.func @transform_3(%arg0: i32) -> (i32, i32) {
    %c0_i32 = arith.constant 0 : i32
    %c0_i32_0 = arith.constant 0 : i32
    %c0_i32_1 = arith.constant 0 : i32
    return %c0_i32, %c0_i32_0 : i32, i32
  }
  func.func @transform_4(%arg0: i32) -> (i32, i32) {
    %c0_i32 = arith.constant 0 : i32
    %c0_i32_0 = arith.constant 0 : i32
    %c0_i32_1 = arith.constant 0 : i32
    return %c0_i32, %c0_i32_0 : i32, i32
  }
  func.func @transform_5(%arg0: i32) -> (i32, i32) {
    %c0_i32 = arith.constant 0 : i32
    %c0_i32_0 = arith.constant 0 : i32
    %c0_i32_1 = arith.constant 0 : i32
    return %c0_i32, %c0_i32_0 : i32, i32
  }
  func.func @transform_6(%arg0: i32) -> (i32, i32) {
    %c0_i32 = arith.constant 0 : i32
    %c0_i32_0 = arith.constant 0 : i32
    %c0_i32_1 = arith.constant 0 : i32
    return %c0_i32, %c0_i32_0 : i32, i32
  }
  func.func @transform_7(%arg0: i32) -> (i32, i32) {
    %c0_i32 = arith.constant 0 : i32
    %c0_i32_0 = arith.constant 0 : i32
    return %arg0, %c0_i32 : i32, i32
  }
}

module attributes {stable_mosaic.version = 11 : i64} {
  func.func @_lstm_kernel(%arg0: i32, %arg1: memref<5x8x512xf32, #tpu.memory_space<vmem>>, %arg2: memref<8x128xf32, #tpu.memory_space<vmem>>, %arg3: memref<8x128xf32, #tpu.memory_space<vmem>>, %arg4: memref<128x512xf32, #tpu.memory_space<vmem>>, %arg5: memref<5x8x128xf32, #tpu.memory_space<vmem>>, %arg6: memref<8x128xf32, #tpu.memory_space<vmem>>, %arg7: memref<8x128xf32, #tpu.memory_space<vmem>>) attributes {dimension_semantics = [#tpu.dimension_semantics<arbitrary>], iteration_bounds = array<i64: 1>, scalar_prefetch = 0 : i64, scratch_operands = 0 : i64, tpu.core_type = #tpu.core_type<tc>, window_params = [{transform_indices = @transform_0, window_bounds = array<i64: 5, 8, 512>}, {pipeline_mode = #tpu.pipeline_mode<synchronous>, transform_indices = @transform_1, window_bounds = array<i64: 8, 128>}, {pipeline_mode = #tpu.pipeline_mode<synchronous>, transform_indices = @transform_2, window_bounds = array<i64: 8, 128>}, {pipeline_mode = #tpu.pipeline_mode<synchronous>, transform_indices = @transform_3, window_bounds = array<i64: 128, 512>}, {transform_indices = @transform_4, window_bounds = array<i64: 5, 8, 128>}, {pipeline_mode = #tpu.pipeline_mode<synchronous>, transform_indices = @transform_5, window_bounds = array<i64: 8, 128>}, {pipeline_mode = #tpu.pipeline_mode<synchronous>, transform_indices = @transform_6, window_bounds = array<i64: 8, 128>}]} {
    %c0_i32 = arith.constant 0 : i32
    %0 = arith.cmpi eq, %arg0, %c0_i32 : i32
    %1 = arith.extui %0 : i1 to i32
    %c0_i32_0 = arith.constant 0 : i32
    %2 = arith.cmpi ne, %1, %c0_i32_0 : i32
    scf.if %2 {
      %c0_50 = arith.constant 0 : index
      %c0_51 = arith.constant 0 : index
      %178 = vector.load %arg2[%c0_50, %c0_51] : memref<8x128xf32, #tpu.memory_space<vmem>>, vector<8x128xf32>
      %c0_52 = arith.constant 0 : index
      %c0_53 = arith.constant 0 : index
      %179 = vector.load %arg6[%c0_52, %c0_53] : memref<8x128xf32, #tpu.memory_space<vmem>>, vector<8x128xf32>
      tpu.vector_store %arg6[%c0_52, %c0_53], %178 {strides = array<i32>} : memref<8x128xf32, #tpu.memory_space<vmem>>, vector<8x128xf32>,
      %c0_54 = arith.constant 0 : index
      %c0_55 = arith.constant 0 : index
      %180 = vector.load %arg3[%c0_54, %c0_55] : memref<8x128xf32, #tpu.memory_space<vmem>>, vector<8x128xf32>
      %c0_56 = arith.constant 0 : index
      %c0_57 = arith.constant 0 : index
      %181 = vector.load %arg7[%c0_56, %c0_57] : memref<8x128xf32, #tpu.memory_space<vmem>>, vector<8x128xf32>
      tpu.vector_store %arg7[%c0_56, %c0_57], %180 {strides = array<i32>} : memref<8x128xf32, #tpu.memory_space<vmem>>, vector<8x128xf32>,
    } else {
    }
    %c0 = arith.constant 0 : index
    %c0_1 = arith.constant 0 : index
    %3 = vector.load %arg4[%c0, %c0_1] : memref<128x512xf32, #tpu.memory_space<vmem>>, vector<128x512xf32>
    %c0_2 = arith.constant 0 : index
    %c0_3 = arith.constant 0 : index
    %4 = vector.load %arg6[%c0_2, %c0_3] : memref<8x128xf32, #tpu.memory_space<vmem>>, vector<8x128xf32>
    %c0_4 = arith.constant 0 : index
    %c0_5 = arith.constant 0 : index
    %5 = vector.load %arg7[%c0_4, %c0_5] : memref<8x128xf32, #tpu.memory_space<vmem>>, vector<8x128xf32>
    %c0_i32_6 = arith.constant 0 : i32
    %6 = arith.index_cast %c0_i32_6 : i32 to index
    %c0_7 = arith.constant 0 : index
    %c0_8 = arith.constant 0 : index
    %7 = vector.load %arg1[%6, %c0_7, %c0_8] : memref<5x8x512xf32, #tpu.memory_space<vmem>>, vector<1x8x512xf32>
    %8 = vector.shape_cast %7 : vector<1x8x512xf32> to vector<8x512xf32>
    %cst = arith.constant dense<0.000000e+00> : vector<8x512xf32>
    %9 = tpu.matmul %4, %3, %cst {dimension_numbers = #tpu.dot_dimension_numbers<[1], [0], [0], [1], [0, 0, 1, 1], [], []>} : vector<8x128xf32>, vector<128x512xf32>, vector<8x512xf32> -> vector<8x512xf32>
    %10 = arith.addf %8, %9 : vector<8x512xf32>
    %11 = vector.extract_strided_slice %10 {offsets = [0, 0], sizes = [8, 128], strides = [1, 1]} : vector<8x512xf32> to vector<8x128xf32>
    %12 = arith.negf %11 : vector<8x128xf32>
    %13 = math.exp %12 : vector<8x128xf32>
    %cst_9 = arith.constant 1.000000e+00 : f32
    %14 = vector.broadcast %cst_9 : f32 to vector<8x128xf32>
    %15 = arith.addf %14, %13 : vector<8x128xf32>
    %16 = arith.divf %14, %15 : vector<8x128xf32>
    %17 = vector.extract_strided_slice %10 {offsets = [0, 128], sizes = [8, 128], strides = [1, 1]} : vector<8x512xf32> to vector<8x128xf32>
    %18 = arith.negf %17 : vector<8x128xf32>
    %19 = math.exp %18 : vector<8x128xf32>
    %cst_10 = arith.constant 1.000000e+00 : f32
    %20 = vector.broadcast %cst_10 : f32 to vector<8x128xf32>
    %21 = arith.addf %20, %19 : vector<8x128xf32>
    %22 = arith.divf %20, %21 : vector<8x128xf32>
    %23 = vector.extract_strided_slice %10 {offsets = [0, 256], sizes = [8, 128], strides = [1, 1]} : vector<8x512xf32> to vector<8x128xf32>
    %24 = math.tanh %23 : vector<8x128xf32>
    %25 = vector.extract_strided_slice %10 {offsets = [0, 384], sizes = [8, 128], strides = [1, 1]} : vector<8x512xf32> to vector<8x128xf32>
    %26 = arith.negf %25 : vector<8x128xf32>
    %27 = math.exp %26 : vector<8x128xf32>
    %cst_11 = arith.constant 1.000000e+00 : f32
    %28 = vector.broadcast %cst_11 : f32 to vector<8x128xf32>
    %29 = arith.addf %28, %27 : vector<8x128xf32>
    %30 = arith.divf %28, %29 : vector<8x128xf32>
    %31 = arith.mulf %22, %5 : vector<8x128xf32>
    %32 = arith.mulf %16, %24 : vector<8x128xf32>
    %33 = arith.addf %31, %32 : vector<8x128xf32>
    %34 = math.tanh %33 : vector<8x128xf32>
    %35 = arith.mulf %30, %34 : vector<8x128xf32>
    %36 = arith.index_cast %c0_i32_6 : i32 to index
    %c0_12 = arith.constant 0 : index
    %c0_13 = arith.constant 0 : index
    %37 = vector.load %arg5[%36, %c0_12, %c0_13] : memref<5x8x128xf32, #tpu.memory_space<vmem>>, vector<1x8x128xf32>
    %38 = vector.shape_cast %37 : vector<1x8x128xf32> to vector<8x128xf32>
    %39 = vector.shape_cast %35 : vector<8x128xf32> to vector<1x8x128xf32>
    tpu.vector_store %arg5[%36, %c0_12, %c0_13], %39 {strides = array<i32>} : memref<5x8x128xf32, #tpu.memory_space<vmem>>, vector<1x8x128xf32>,
    %c1_i32 = arith.constant 1 : i32
    %40 = arith.index_cast %c1_i32 : i32 to index
    %c0_14 = arith.constant 0 : index
    %c0_15 = arith.constant 0 : index
    %41 = vector.load %arg1[%40, %c0_14, %c0_15] : memref<5x8x512xf32, #tpu.memory_space<vmem>>, vector<1x8x512xf32>
    %42 = vector.shape_cast %41 : vector<1x8x512xf32> to vector<8x512xf32>
    %cst_16 = arith.constant dense<0.000000e+00> : vector<8x512xf32>
    %43 = tpu.matmul %35, %3, %cst_16 {dimension_numbers = #tpu.dot_dimension_numbers<[1], [0], [0], [1], [0, 0, 1, 1], [], []>} : vector<8x128xf32>, vector<128x512xf32>, vector<8x512xf32> -> vector<8x512xf32>
    %44 = arith.addf %42, %43 : vector<8x512xf32>
    %45 = vector.extract_strided_slice %44 {offsets = [0, 0], sizes = [8, 128], strides = [1, 1]} : vector<8x512xf32> to vector<8x128xf32>
    %46 = arith.negf %45 : vector<8x128xf32>
    %47 = math.exp %46 : vector<8x128xf32>
    %cst_17 = arith.constant 1.000000e+00 : f32
    %48 = vector.broadcast %cst_17 : f32 to vector<8x128xf32>
    %49 = arith.addf %48, %47 : vector<8x128xf32>
    %50 = arith.divf %48, %49 : vector<8x128xf32>
    %51 = vector.extract_strided_slice %44 {offsets = [0, 128], sizes = [8, 128], strides = [1, 1]} : vector<8x512xf32> to vector<8x128xf32>
    %52 = arith.negf %51 : vector<8x128xf32>
    %53 = math.exp %52 : vector<8x128xf32>
    %cst_18 = arith.constant 1.000000e+00 : f32
    %54 = vector.broadcast %cst_18 : f32 to vector<8x128xf32>
    %55 = arith.addf %54, %53 : vector<8x128xf32>
    %56 = arith.divf %54, %55 : vector<8x128xf32>
    %57 = vector.extract_strided_slice %44 {offsets = [0, 256], sizes = [8, 128], strides = [1, 1]} : vector<8x512xf32> to vector<8x128xf32>
    %58 = math.tanh %57 : vector<8x128xf32>
    %59 = vector.extract_strided_slice %44 {offsets = [0, 384], sizes = [8, 128], strides = [1, 1]} : vector<8x512xf32> to vector<8x128xf32>
    %60 = arith.negf %59 : vector<8x128xf32>
    %61 = math.exp %60 : vector<8x128xf32>
    %cst_19 = arith.constant 1.000000e+00 : f32
    %62 = vector.broadcast %cst_19 : f32 to vector<8x128xf32>
    %63 = arith.addf %62, %61 : vector<8x128xf32>
    %64 = arith.divf %62, %63 : vector<8x128xf32>
    %65 = arith.mulf %56, %33 : vector<8x128xf32>
    %66 = arith.mulf %50, %58 : vector<8x128xf32>
    %67 = arith.addf %65, %66 : vector<8x128xf32>
    %68 = math.tanh %67 : vector<8x128xf32>
    %69 = arith.mulf %64, %68 : vector<8x128xf32>
    %70 = arith.index_cast %c1_i32 : i32 to index
    %c0_20 = arith.constant 0 : index
    %c0_21 = arith.constant 0 : index
    %71 = vector.load %arg5[%70, %c0_20, %c0_21] : memref<5x8x128xf32, #tpu.memory_space<vmem>>, vector<1x8x128xf32>
    %72 = vector.shape_cast %71 : vector<1x8x128xf32> to vector<8x128xf32>
    %73 = vector.shape_cast %69 : vector<8x128xf32> to vector<1x8x128xf32>
    tpu.vector_store %arg5[%70, %c0_20, %c0_21], %73 {strides = array<i32>} : memref<5x8x128xf32, #tpu.memory_space<vmem>>, vector<1x8x128xf32>,
    %c2_i32 = arith.constant 2 : i32
    %74 = arith.index_cast %c2_i32 : i32 to index
    %c0_22 = arith.constant 0 : index
    %c0_23 = arith.constant 0 : index
    %75 = vector.load %arg1[%74, %c0_22, %c0_23] : memref<5x8x512xf32, #tpu.memory_space<vmem>>, vector<1x8x512xf32>
    %76 = vector.shape_cast %75 : vector<1x8x512xf32> to vector<8x512xf32>
    %cst_24 = arith.constant dense<0.000000e+00> : vector<8x512xf32>
    %77 = tpu.matmul %69, %3, %cst_24 {dimension_numbers = #tpu.dot_dimension_numbers<[1], [0], [0], [1], [0, 0, 1, 1], [], []>} : vector<8x128xf32>, vector<128x512xf32>, vector<8x512xf32> -> vector<8x512xf32>
    %78 = arith.addf %76, %77 : vector<8x512xf32>
    %79 = vector.extract_strided_slice %78 {offsets = [0, 0], sizes = [8, 128], strides = [1, 1]} : vector<8x512xf32> to vector<8x128xf32>
    %80 = arith.negf %79 : vector<8x128xf32>
    %81 = math.exp %80 : vector<8x128xf32>
    %cst_25 = arith.constant 1.000000e+00 : f32
    %82 = vector.broadcast %cst_25 : f32 to vector<8x128xf32>
    %83 = arith.addf %82, %81 : vector<8x128xf32>
    %84 = arith.divf %82, %83 : vector<8x128xf32>
    %85 = vector.extract_strided_slice %78 {offsets = [0, 128], sizes = [8, 128], strides = [1, 1]} : vector<8x512xf32> to vector<8x128xf32>
    %86 = arith.negf %85 : vector<8x128xf32>
    %87 = math.exp %86 : vector<8x128xf32>
    %cst_26 = arith.constant 1.000000e+00 : f32
    %88 = vector.broadcast %cst_26 : f32 to vector<8x128xf32>
    %89 = arith.addf %88, %87 : vector<8x128xf32>
    %90 = arith.divf %88, %89 : vector<8x128xf32>
    %91 = vector.extract_strided_slice %78 {offsets = [0, 256], sizes = [8, 128], strides = [1, 1]} : vector<8x512xf32> to vector<8x128xf32>
    %92 = math.tanh %91 : vector<8x128xf32>
    %93 = vector.extract_strided_slice %78 {offsets = [0, 384], sizes = [8, 128], strides = [1, 1]} : vector<8x512xf32> to vector<8x128xf32>
    %94 = arith.negf %93 : vector<8x128xf32>
    %95 = math.exp %94 : vector<8x128xf32>
    %cst_27 = arith.constant 1.000000e+00 : f32
    %96 = vector.broadcast %cst_27 : f32 to vector<8x128xf32>
    %97 = arith.addf %96, %95 : vector<8x128xf32>
    %98 = arith.divf %96, %97 : vector<8x128xf32>
    %99 = arith.mulf %90, %67 : vector<8x128xf32>
    %100 = arith.mulf %84, %92 : vector<8x128xf32>
    %101 = arith.addf %99, %100 : vector<8x128xf32>
    %102 = math.tanh %101 : vector<8x128xf32>
    %103 = arith.mulf %98, %102 : vector<8x128xf32>
    %104 = arith.index_cast %c2_i32 : i32 to index
    %c0_28 = arith.constant 0 : index
    %c0_29 = arith.constant 0 : index
    %105 = vector.load %arg5[%104, %c0_28, %c0_29] : memref<5x8x128xf32, #tpu.memory_space<vmem>>, vector<1x8x128xf32>
    %106 = vector.shape_cast %105 : vector<1x8x128xf32> to vector<8x128xf32>
    %107 = vector.shape_cast %103 : vector<8x128xf32> to vector<1x8x128xf32>
    tpu.vector_store %arg5[%104, %c0_28, %c0_29], %107 {strides = array<i32>} : memref<5x8x128xf32, #tpu.memory_space<vmem>>, vector<1x8x128xf32>,
    %c3_i32 = arith.constant 3 : i32
    %108 = arith.index_cast %c3_i32 : i32 to index
    %c0_30 = arith.constant 0 : index
    %c0_31 = arith.constant 0 : index
    %109 = vector.load %arg1[%108, %c0_30, %c0_31] : memref<5x8x512xf32, #tpu.memory_space<vmem>>, vector<1x8x512xf32>
    %110 = vector.shape_cast %109 : vector<1x8x512xf32> to vector<8x512xf32>
    %cst_32 = arith.constant dense<0.000000e+00> : vector<8x512xf32>
    %111 = tpu.matmul %103, %3, %cst_32 {dimension_numbers = #tpu.dot_dimension_numbers<[1], [0], [0], [1], [0, 0, 1, 1], [], []>} : vector<8x128xf32>, vector<128x512xf32>, vector<8x512xf32> -> vector<8x512xf32>
    %112 = arith.addf %110, %111 : vector<8x512xf32>
    %113 = vector.extract_strided_slice %112 {offsets = [0, 0], sizes = [8, 128], strides = [1, 1]} : vector<8x512xf32> to vector<8x128xf32>
    %114 = arith.negf %113 : vector<8x128xf32>
    %115 = math.exp %114 : vector<8x128xf32>
    %cst_33 = arith.constant 1.000000e+00 : f32
    %116 = vector.broadcast %cst_33 : f32 to vector<8x128xf32>
    %117 = arith.addf %116, %115 : vector<8x128xf32>
    %118 = arith.divf %116, %117 : vector<8x128xf32>
    %119 = vector.extract_strided_slice %112 {offsets = [0, 128], sizes = [8, 128], strides = [1, 1]} : vector<8x512xf32> to vector<8x128xf32>
    %120 = arith.negf %119 : vector<8x128xf32>
    %121 = math.exp %120 : vector<8x128xf32>
    %cst_34 = arith.constant 1.000000e+00 : f32
    %122 = vector.broadcast %cst_34 : f32 to vector<8x128xf32>
    %123 = arith.addf %122, %121 : vector<8x128xf32>
    %124 = arith.divf %122, %123 : vector<8x128xf32>
    %125 = vector.extract_strided_slice %112 {offsets = [0, 256], sizes = [8, 128], strides = [1, 1]} : vector<8x512xf32> to vector<8x128xf32>
    %126 = math.tanh %125 : vector<8x128xf32>
    %127 = vector.extract_strided_slice %112 {offsets = [0, 384], sizes = [8, 128], strides = [1, 1]} : vector<8x512xf32> to vector<8x128xf32>
    %128 = arith.negf %127 : vector<8x128xf32>
    %129 = math.exp %128 : vector<8x128xf32>
    %cst_35 = arith.constant 1.000000e+00 : f32
    %130 = vector.broadcast %cst_35 : f32 to vector<8x128xf32>
    %131 = arith.addf %130, %129 : vector<8x128xf32>
    %132 = arith.divf %130, %131 : vector<8x128xf32>
    %133 = arith.mulf %124, %101 : vector<8x128xf32>
    %134 = arith.mulf %118, %126 : vector<8x128xf32>
    %135 = arith.addf %133, %134 : vector<8x128xf32>
    %136 = math.tanh %135 : vector<8x128xf32>
    %137 = arith.mulf %132, %136 : vector<8x128xf32>
    %138 = arith.index_cast %c3_i32 : i32 to index
    %c0_36 = arith.constant 0 : index
    %c0_37 = arith.constant 0 : index
    %139 = vector.load %arg5[%138, %c0_36, %c0_37] : memref<5x8x128xf32, #tpu.memory_space<vmem>>, vector<1x8x128xf32>
    %140 = vector.shape_cast %139 : vector<1x8x128xf32> to vector<8x128xf32>
    %141 = vector.shape_cast %137 : vector<8x128xf32> to vector<1x8x128xf32>
    tpu.vector_store %arg5[%138, %c0_36, %c0_37], %141 {strides = array<i32>} : memref<5x8x128xf32, #tpu.memory_space<vmem>>, vector<1x8x128xf32>,
    %c4_i32 = arith.constant 4 : i32
    %142 = arith.index_cast %c4_i32 : i32 to index
    %c0_38 = arith.constant 0 : index
    %c0_39 = arith.constant 0 : index
    %143 = vector.load %arg1[%142, %c0_38, %c0_39] : memref<5x8x512xf32, #tpu.memory_space<vmem>>, vector<1x8x512xf32>
    %144 = vector.shape_cast %143 : vector<1x8x512xf32> to vector<8x512xf32>
    %cst_40 = arith.constant dense<0.000000e+00> : vector<8x512xf32>
    %145 = tpu.matmul %137, %3, %cst_40 {dimension_numbers = #tpu.dot_dimension_numbers<[1], [0], [0], [1], [0, 0, 1, 1], [], []>} : vector<8x128xf32>, vector<128x512xf32>, vector<8x512xf32> -> vector<8x512xf32>
    %146 = arith.addf %144, %145 : vector<8x512xf32>
    %147 = vector.extract_strided_slice %146 {offsets = [0, 0], sizes = [8, 128], strides = [1, 1]} : vector<8x512xf32> to vector<8x128xf32>
    %148 = arith.negf %147 : vector<8x128xf32>
    %149 = math.exp %148 : vector<8x128xf32>
    %cst_41 = arith.constant 1.000000e+00 : f32
    %150 = vector.broadcast %cst_41 : f32 to vector<8x128xf32>
    %151 = arith.addf %150, %149 : vector<8x128xf32>
    %152 = arith.divf %150, %151 : vector<8x128xf32>
    %153 = vector.extract_strided_slice %146 {offsets = [0, 128], sizes = [8, 128], strides = [1, 1]} : vector<8x512xf32> to vector<8x128xf32>
    %154 = arith.negf %153 : vector<8x128xf32>
    %155 = math.exp %154 : vector<8x128xf32>
    %cst_42 = arith.constant 1.000000e+00 : f32
    %156 = vector.broadcast %cst_42 : f32 to vector<8x128xf32>
    %157 = arith.addf %156, %155 : vector<8x128xf32>
    %158 = arith.divf %156, %157 : vector<8x128xf32>
    %159 = vector.extract_strided_slice %146 {offsets = [0, 256], sizes = [8, 128], strides = [1, 1]} : vector<8x512xf32> to vector<8x128xf32>
    %160 = math.tanh %159 : vector<8x128xf32>
    %161 = vector.extract_strided_slice %146 {offsets = [0, 384], sizes = [8, 128], strides = [1, 1]} : vector<8x512xf32> to vector<8x128xf32>
    %162 = arith.negf %161 : vector<8x128xf32>
    %163 = math.exp %162 : vector<8x128xf32>
    %cst_43 = arith.constant 1.000000e+00 : f32
    %164 = vector.broadcast %cst_43 : f32 to vector<8x128xf32>
    %165 = arith.addf %164, %163 : vector<8x128xf32>
    %166 = arith.divf %164, %165 : vector<8x128xf32>
    %167 = arith.mulf %158, %135 : vector<8x128xf32>
    %168 = arith.mulf %152, %160 : vector<8x128xf32>
    %169 = arith.addf %167, %168 : vector<8x128xf32>
    %170 = math.tanh %169 : vector<8x128xf32>
    %171 = arith.mulf %166, %170 : vector<8x128xf32>
    %172 = arith.index_cast %c4_i32 : i32 to index
    %c0_44 = arith.constant 0 : index
    %c0_45 = arith.constant 0 : index
    %173 = vector.load %arg5[%172, %c0_44, %c0_45] : memref<5x8x128xf32, #tpu.memory_space<vmem>>, vector<1x8x128xf32>
    %174 = vector.shape_cast %173 : vector<1x8x128xf32> to vector<8x128xf32>
    %175 = vector.shape_cast %171 : vector<8x128xf32> to vector<1x8x128xf32>
    tpu.vector_store %arg5[%172, %c0_44, %c0_45], %175 {strides = array<i32>} : memref<5x8x128xf32, #tpu.memory_space<vmem>>, vector<1x8x128xf32>,
    %c5_i32 = arith.constant 5 : i32
    %c0_46 = arith.constant 0 : index
    %c0_47 = arith.constant 0 : index
    %176 = vector.load %arg6[%c0_46, %c0_47] : memref<8x128xf32, #tpu.memory_space<vmem>>, vector<8x128xf32>
    tpu.vector_store %arg6[%c0_46, %c0_47], %171 {strides = array<i32>} : memref<8x128xf32, #tpu.memory_space<vmem>>, vector<8x128xf32>,
    %c0_48 = arith.constant 0 : index
    %c0_49 = arith.constant 0 : index
    %177 = vector.load %arg7[%c0_48, %c0_49] : memref<8x128xf32, #tpu.memory_space<vmem>>, vector<8x128xf32>
    tpu.vector_store %arg7[%c0_48, %c0_49], %169 {strides = array<i32>} : memref<8x128xf32, #tpu.memory_space<vmem>>, vector<8x128xf32>,
    return
  }
  func.func @transform_0(%arg0: i32) -> (i32, i32, i32) {
    %c0_i32 = arith.constant 0 : i32
    %c0_i32_0 = arith.constant 0 : i32
    %c0_i32_1 = arith.constant 0 : i32
    return %arg0, %c0_i32, %c0_i32_0 : i32, i32, i32
  }
  func.func @transform_1(%arg0: i32) -> (i32, i32) {
    %c0_i32 = arith.constant 0 : i32
    %c0_i32_0 = arith.constant 0 : i32
    %c0_i32_1 = arith.constant 0 : i32
    return %c0_i32, %c0_i32_0 : i32, i32
  }
  func.func @transform_2(%arg0: i32) -> (i32, i32) {
    %c0_i32 = arith.constant 0 : i32
    %c0_i32_0 = arith.constant 0 : i32
    %c0_i32_1 = arith.constant 0 : i32
    return %c0_i32, %c0_i32_0 : i32, i32
  }
  func.func @transform_3(%arg0: i32) -> (i32, i32) {
    %c0_i32 = arith.constant 0 : i32
    %c0_i32_0 = arith.constant 0 : i32
    %c0_i32_1 = arith.constant 0 : i32
    return %c0_i32, %c0_i32_0 : i32, i32
  }
  func.func @transform_4(%arg0: i32) -> (i32, i32, i32) {
    %c0_i32 = arith.constant 0 : i32
    %c0_i32_0 = arith.constant 0 : i32
    %c0_i32_1 = arith.constant 0 : i32
    return %arg0, %c0_i32, %c0_i32_0 : i32, i32, i32
  }
  func.func @transform_5(%arg0: i32) -> (i32, i32) {
    %c0_i32 = arith.constant 0 : i32
    %c0_i32_0 = arith.constant 0 : i32
    %c0_i32_1 = arith.constant 0 : i32
    return %c0_i32, %c0_i32_0 : i32, i32
  }
  func.func @transform_6(%arg0: i32) -> (i32, i32) {
    %c0_i32 = arith.constant 0 : i32
    %c0_i32_0 = arith.constant 0 : i32
    %c0_i32_1 = arith.constant 0 : i32
    return %c0_i32, %c0_i32_0 : i32, i32
  }
}

module attributes {stable_mosaic.version = 11 : i64} {
  func.func @_head_kernel(%arg0: i32, %arg1: memref<40x128xf32, #tpu.memory_space<vmem>>, %arg2: memref<128x128xf32, #tpu.memory_space<vmem>>, %arg3: memref<1x128xf32, #tpu.memory_space<vmem>>, %arg4: memref<40x128xf32, #tpu.memory_space<vmem>>) attributes {dimension_semantics = [#tpu.dimension_semantics<parallel>], iteration_bounds = array<i64: 1>, scalar_prefetch = 0 : i64, scratch_operands = 0 : i64, tpu.core_type = #tpu.core_type<tc>, window_params = [{transform_indices = @transform_0, window_bounds = array<i64: 40, 128>}, {pipeline_mode = #tpu.pipeline_mode<synchronous>, transform_indices = @transform_1, window_bounds = array<i64: 128, 128>}, {pipeline_mode = #tpu.pipeline_mode<synchronous>, transform_indices = @transform_2, window_bounds = array<i64: 1, 128>}, {transform_indices = @transform_3, window_bounds = array<i64: 40, 128>}]} {
    %c0 = arith.constant 0 : index
    %c0_0 = arith.constant 0 : index
    %0 = vector.load %arg1[%c0, %c0_0] : memref<40x128xf32, #tpu.memory_space<vmem>>, vector<40x128xf32>
    %c0_1 = arith.constant 0 : index
    %c0_2 = arith.constant 0 : index
    %1 = vector.load %arg2[%c0_1, %c0_2] : memref<128x128xf32, #tpu.memory_space<vmem>>, vector<128x128xf32>
    %cst = arith.constant dense<0.000000e+00> : vector<40x128xf32>
    %2 = tpu.matmul %0, %1, %cst {dimension_numbers = #tpu.dot_dimension_numbers<[1], [0], [0], [1], [0, 0, 1, 1], [], []>} : vector<40x128xf32>, vector<128x128xf32>, vector<40x128xf32> -> vector<40x128xf32>
    %c0_3 = arith.constant 0 : index
    %c0_4 = arith.constant 0 : index
    %3 = vector.load %arg3[%c0_3, %c0_4] : memref<1x128xf32, #tpu.memory_space<vmem>>, vector<1x128xf32>
    %4 = vector.broadcast %3 : vector<1x128xf32> to vector<40x128xf32>
    %5 = arith.addf %2, %4 : vector<40x128xf32>
    %c0_5 = arith.constant 0 : index
    %c0_6 = arith.constant 0 : index
    %6 = vector.load %arg4[%c0_5, %c0_6] : memref<40x128xf32, #tpu.memory_space<vmem>>, vector<40x128xf32>
    tpu.vector_store %arg4[%c0_5, %c0_6], %5 {strides = array<i32>} : memref<40x128xf32, #tpu.memory_space<vmem>>, vector<40x128xf32>,
    return
  }
  func.func @transform_0(%arg0: i32) -> (i32, i32) {
    %c0_i32 = arith.constant 0 : i32
    %c0_i32_0 = arith.constant 0 : i32
    return %arg0, %c0_i32 : i32, i32
  }
  func.func @transform_1(%arg0: i32) -> (i32, i32) {
    %c0_i32 = arith.constant 0 : i32
    %c0_i32_0 = arith.constant 0 : i32
    %c0_i32_1 = arith.constant 0 : i32
    return %c0_i32, %c0_i32_0 : i32, i32
  }
  func.func @transform_2(%arg0: i32) -> (i32, i32) {
    %c0_i32 = arith.constant 0 : i32
    %c0_i32_0 = arith.constant 0 : i32
    %c0_i32_1 = arith.constant 0 : i32
    return %c0_i32, %c0_i32_0 : i32, i32
  }
  func.func @transform_3(%arg0: i32) -> (i32, i32) {
    %c0_i32 = arith.constant 0 : i32
    %c0_i32_0 = arith.constant 0 : i32
    return %arg0, %c0_i32 : i32, i32
  }
}

</mosaic_0001>

<bundles_post_ra>
// kernel: tpu_custom_call.1
= control target key start
LH: loop header
LB: loop body
LE: loop exit
PB: predicated region body
PF: predicated region fallthrough
CT: control target
= control target key end

     0   :  { %7 = vsyncpa [#allocation3], 0  ;;  %s649_s0 = inlined_call_operand.hbm [shape: f32[16,128], index: 0, kind: input, shape index: {}]   ;;  %s650_s1 = inlined_call_operand.hbm [shape: f32[8,128], index: 1, kind: input, shape index: {}]   ;;  %s651_s2 = inlined_call_operand.hbm [shape: f32[16,128], index: 2, kind: output, shape index: {}]  }
   0x1   :  { %9 = vsyncpa [#allocation3 + $0x1], 0 }
   0x2   :  { %10 = vsyncpa [#allocation6], 0 }
   0x3   :  { %11 = vsyncpa [#allocation4], 0 }
   0x4   :  { %13 = vsyncpa [#allocation4 + $0x1], 0  ;;  %s483_s9 = smov 0   ;;  %s485_s10 = smov 0  }
   0x5   :  { %s487_s11 = smov 0   ;;  %s489_s12 = smov 0  }
   0x6 LB: > { %s504_s13 = sadd.s32 4294967295, %s463_s12   ;;  %s270_s14 = sadd.s32 4294967294, %s463_s12   ;;  %s463_s12 = sphi %s489_s12, %s674_s12   ;;  %s459_s11 = sphi %s487_s11, %s673_s11   ;;  %s455_s10 = sphi %s485_s10, %s672_s10   ;;  %s451_s9 = sphi %s483_s9, %s671_s9  }
   0x7   : > { %p39_p0 = scmp.ne.s32.totalorder %s455_s10, %s451_s9  ;;  %p652_p1 = scmp.eq.s32.totalorder %s504_s13, 0 }
   0x8   : > { %p90_p3 = scmp.eq.s32.totalorder %s270_s14, 1  ;;  %p271_p5 = scmp.ge.s32.totalorder %s463_s12, 1 }
   0x9   : > { %p513_p4 = por %p652_p1, %p39_p0  ;;  %p97_p7 = scmp.lt.s32.totalorder %s463_s12, 3 }
   0xa   : > { %p518_p6 = por %p90_p3, %p39_p0  ;;  %s465_s18 = smov [#allocation5]  }
   0xb   : > { %s656_s15 = scalar_select %p513_p4, 1, 0 }
   0xc   : > { %s657_s16 = scalar_select %p518_p6, 1, 0 }
   0xd   : > { %p523_p8 = pnand %p271_p5, %p97_p7  ;;  %s110_s19 = sshll.u32 %s465_s18, 4  ;;  %s111_s19 = int_to_ptr.vmem [resolvable:$true] %s110_s19 }
   0xe   : > { %s531_s20 = sadd.s32 1, %s463_s12   ;;  %s26_s24 = sadd.s32 1, %s459_s11 }
   0xf   : > { %s658_s17 = scalar_select %p523_p8, 1, 0 }
  0x10   : > { %p292_p10 = pneg %p523_p8  ;;  %s23_s22 = ssub.s32 %s463_s12, %s531_s20 }
  0x11   : > { %p541_p12 = scmp.eq.s32.totalorder %s23_s22, 0  ;;  %p33_p13 = scmp.ne.s32.totalorder %s459_s11, %s455_s10 }
  0x12   : > { %p535_p11 = pnand %p292_p10, %p652_p1  ;;  %s352_s25 = scalar_lea.vmem %s111_s19, 128 }
  0x13   : > { %p353_p3 = scmp.ne.s32.totalorder %s111_s19, %s352_s25  ;;  %p360_p9 = scmp.lt.s32.totalorder %s111_s19, %s111_s19 }
  0x14   : > { %p343_p0 = pneg %p535_p11  ;;  %p361_p2 = scmp.lt.s32.totalorder %s352_s25, %s352_s25 }
  0x16   : > { %p355_p5 = pnand %p353_p3, %p343_p0  ;;  %p362_p10 = por %p361_p2, %p360_p9 }
  0x18   : > { %p356_p7 = pneg %p355_p5 }
  0x1a   : > { %p363_p1 = pnand %p362_p10, %p356_p7 }
  0x1c   : > { %366 = shalt.err (!%p363_p1)
}
  0x1d   : > { %295 = dma.hbm_to_vmem [thread:$0]  (!%p535_p11), %s650_s1, 128, %s111_s19, [#allocation6]  }
  0x1e   : > { %s558_s28 = scalar_select %p541_p12, %s459_s11, %s26_s24  }
  0x1f   : > { %p34_p1 = scmp.eq.s32.totalorder %s463_s12, 0  ;;  %p661_p2 = scmp.eq.s32.totalorder %s504_s13, 1 }
  0x20   : > { %p305_p0 = scmp.lt.s32.totalorder %s463_s12, 2  ;;  %s121_s30 = sand.u32 1, %s459_s11  }
  0x21   : > { %p566_p9 = por %p661_p2, %p33_p13  ;;  %p35_p3 = por %p34_p1, %p33_p13 }
  0x22   : > { %s274_s3 = sshll.u32 %s121_s30, 3  ;;  %s275_s4 = sshll.u32 %s463_s12, 7 }
  0x23   : > { %s662_s29 = scalar_select %p566_p9, 1, 0 }
  0x24   : > { %s579_s7 = scalar_lea.hbm %s649_s0, %s275_s4  ;;  %s125_s8 = scalar_lea.vmem [#allocation2], %s274_s3 }
  0x25   : > { %s132_s14 = sshll.u32 %s125_s8, 4  ;;  %p581_p11 = pnand %p305_p0, %p35_p3  ;;  %s133_s14 = int_to_ptr.vmem [resolvable:$true] %s132_s14 }
  0x26   : > { %s122_s19 = scalar_lea.sflag [#allocation3], %s121_s30  ;;  %s367_s21 = scalar_lea.hbm %s579_s7, 128 }
  0x27   : > { %p368_p12 = scmp.ne.s32.totalorder %s579_s7, %s367_s21  ;;  %p369_p13 = pneg %p581_p11 }
  0x28   : > { %s372_s24 = scalar_lea.hbm %s649_s0, 256  ;;  %p373_p10 = scmp.lt.s32.totalorder %s579_s7, %s649_s0 }
  0x29   : > { %p370_p5 = pnand %p369_p13, %p368_p12  ;;  %p374_p1 = scmp.lt.s32.totalorder %s372_s24, %s367_s21 }
  0x2b   : > { %p371_p7 = pneg %p370_p5  ;;  %p375_p2 = por %p374_p1, %p373_p10 }
  0x2d   : > { %p376_p0 = pnand %p375_p2, %p371_p7 }
  0x2f   : > { %379 = shalt.err (!%p376_p0)
}
  0x30   : > { %s380_s27 = scalar_lea.vmem %s133_s14, 128  ;;  %s466_s30 = smov [#allocation2]  }
  0x31   : > { %p381_p3 = scmp.ne.s32.totalorder %s133_s14, %s380_s27  ;;  %s385_s3 = sshll.u32 %s466_s30, 4  ;;  %s386_s3 = int_to_ptr.vmem [resolvable:$false] %s385_s3 }
  0x32   : > { %s387_s4 = scalar_lea.vmem %s386_s3, 256  ;;  %p388_p12 = scmp.lt.s32.totalorder %s133_s14, %s386_s3 }
  0x33   : > { %p383_p6 = pnand %p381_p3, %p369_p13  ;;  %p389_p5 = scmp.lt.s32.totalorder %s387_s4, %s380_s27 }
  0x35   : > { %p384_p9 = pneg %p383_p6  ;;  %p390_p4 = por %p389_p5, %p388_p12 }
  0x37   : > { %p391_p8 = pnand %p390_p4, %p384_p9 }
  0x39   : > { %394 = shalt.err (!%p391_p8)
}
  0x3a   : > { %299 = dma.hbm_to_vmem [thread:$0]  (!%p581_p11), %s579_s7, 128, %s133_s14, %s122_s19  }
  0x3b   : > { %p664_p7 = scmp.ne.s32.totalorder %s658_s17, 0 }
  0x3c   : > { %s602_s5 = sand.u32 (!%p664_p7), 1, %s455_s10   ;;  %p665_p6 = scmp.ne.s32.totalorder (!%p664_p7), %s656_s15, 0 }
  0x3d   : > { %141 = sbr.rel (%p664_p7) target bundleno = 95 (0x5f), region = 28  ;;  %s277_s6 = sshll.u32 (!%p664_p7), %s602_s5, 3 }
  0x3e   : > { %s144_s8 = scalar_lea.sflag (!%p664_p7), [#allocation3], %s602_s5  ;;  %s147_s21 = scalar_lea.vmem (!%p664_p7), [#allocation2], %s277_s6 }
  0x42   : > { %438 = dma.done.wait (%p665_p6), %s144_s8, 128  }
  0x43   : > { %440 = vsyncadd (%p665_p6), %s144_s8, 4294967168  ;;  %p666_p4 = scmp.eq.s32.totalorder %s504_s13, 0 }
  0x45   : > { %442 = dma.done.wait (%p666_p4), [#allocation6], 128   ;;  %p667_p8 = pmov %p666_p4 }
  0x46   : > { %s171_s17 = scalar_lea.vmem [#allocation7], %s277_s6  ;;  %s281_s14 = sshll.u32 %s504_s13, 7  ;;  %v172_v0 = vld [vmem:[%s147_s21] sm:$0xff]  ;;  %v173_v1 = vld [vmem:[#allocation5] sm:$0xff] }
  0x47   : > { %444 = vsyncadd (%p667_p8), [#allocation6], 4294967168  ;;  %s190_s7 = sshll.u32 %s171_s17, 4  ;;  %v174_v2 = vadd.f32 %v173_v1, %v172_v0  ;;  %s188_s15 = scalar_lea.hbm %s651_s2, %s281_s14  ;;  %s191_s7 = int_to_ptr.vmem [resolvable:$true] %s190_s7 }
  0x48   : > { %s177_s22 = scalar_lea.sflag [#allocation4], %s602_s5  ;;  %s395_s23 = scalar_lea.vmem %s191_s7, 128 }
  0x49   : > { %175 = vst [vmem:[%s171_s17] sm:$0xff] %v174_v2  ;;  %p396_p9 = scmp.ne.s32.totalorder %s191_s7, %s395_s23  ;;  %p668_p11 = scmp.ne.s32.totalorder %s662_s29, 0 }
  0x4a   : > { %s467_s24 = smov [#allocation7]  }
  0x4b   : > { %p397_p13 = pnand %p396_p9, %p668_p11  ;;  %s399_s25 = sshll.u32 %s467_s24, 4  ;;  %s400_s25 = int_to_ptr.vmem [resolvable:$false] %s399_s25 }
  0x4c   : > { %s401_s26 = scalar_lea.vmem %s400_s25, 256  ;;  %p402_p1 = scmp.lt.s32.totalorder %s191_s7, %s400_s25 }
  0x4d   : > { %p398_p10 = pneg %p397_p13  ;;  %p403_p2 = scmp.lt.s32.totalorder %s401_s26, %s395_s23 }
  0x4f   : > { %p404_p0 = por %p403_p2, %p402_p1 }
  0x51   : > { %p405_p3 = pnand %p404_p0, %p398_p10 }
  0x53   : > { %408 = shalt.err (!%p405_p3)
}
  0x54   : > { %s409_s13 = scalar_lea.hbm %s188_s15, 128  ;;  %s413_s3 = scalar_lea.hbm %s651_s2, 256 }
  0x55   : > { %p410_p12 = scmp.ne.s32.totalorder %s188_s15, %s409_s13  ;;  %p414_p6 = scmp.lt.s32.totalorder %s188_s15, %s651_s2 }
  0x56   : > { %p415_p4 = scmp.lt.s32.totalorder %s413_s3, %s409_s13 }
  0x57   : > { %p411_p5 = pnand %p410_p12, %p668_p11 }
  0x58   : > { %p416_p8 = por %p415_p4, %p414_p6 }
  0x59   : > { %p412_p7 = pneg %p411_p5 }
  0x5b   : > { %p417_p9 = pnand %p416_p8, %p412_p7 }
  0x5d   : > { %420 = shalt.err (!%p417_p9)
}
  0x5e   : > { %290 = dma.vmem_to_hbm [thread:$0]  (%p668_p11), %s191_s7, 128, %s188_s15, %s177_s22  }
  0x5f PF: > { %s202_s6 = sand.u32 1, %s451_s9   ;;  %p669_p13 = scmp.ne.s32.totalorder %s657_s16, 0 }
  0x60   : > { %p670_p10 = scmp.ge.s32.totalorder %s463_s12, 2  ;;  %s203_s8 = scalar_lea.sflag [#allocation4], %s202_s6 }
  0x62   : > { %p301_p1 = pnand %p670_p10, %p669_p13 }
  0x64   : > { %p302_p2 = pneg %p301_p1 }
  0x66   : > { %446 = dma.done.wait (%p302_p2), %s203_s8, 128  }
  0x67   : > { %448 = vsyncadd (%p302_p2), %s203_s8, 4294967168  ;;  %p16_p0 = scmp.ge.s32.totalorder %s531_s20, 4   ;;  %s671_s9 = smov %s455_s10 }
  0x68   : > { %s672_s10 = smov %s459_s11  ;;  %s673_s11 = smov %s558_s28 }
  0x69   : > { %s674_s12 = smov %s531_s20  ;;  %18 = sbr.rel (!%p16_p0) target bundleno = 6 (0x6), region = 77 }
  0x6e   :  { %208 = vsyncpa [#allocation3], 1 }
  0x6f   :  { %210 = vsyncpa [#allocation3 + $0x1], 1 }
  0x70   :  { %211 = vsyncpa [#allocation6], 1 }
  0x71   :  { %212 = vsyncpa [#allocation4], 1 }
  0x72   :  { %214 = vsyncpa [#allocation4 + $0x1], 1 }

// kernel: squeeze.2
= control target key start
LH: loop header
LB: loop body
LE: loop exit
PB: predicated region body
PF: predicated region fallthrough
CT: control target
= control target key end

     0   :  { %vm3_vm0 = vcmask 39936   ;;  %s41_s0 = inlined_call_operand.vmem [shape: f32[5,6,1], index: 0, kind: input, shape index: {}]   ;;  %s42_s1 = inlined_call_operand.vmem [shape: f32[5,2,3], index: 1, kind: output, shape index: {}]  }
   0x1   :  { %v2_v0 = vld [vmem:[%s41_s0] sm:$0x3f]  }
   0x2   :  { %4 = vst.msk [vmem:[#allocation0] sm:$0x7] %vm3_vm0, %v2_v0   ;;  %6 = vst.msk [vmem:[#allocation0 + $0x5] sm:$0x38] %vm3_vm0, %v2_v0  }
   0x9   :  { %v11_v1 = vld [vmem:[#allocation0] sm:$0xf]  ;;  %v16_v2 = vld [vmem:[#allocation0 + $0x8] sm:$0xf] }
   0xa   :  { %14 = vst [vmem:[%s42_s1] sm:$0xf] %v11_v1  ;;  %21 = vst [vmem:[%s42_s1 + $0x4] sm:$0xf] %v16_v2 }

// kernel: feudal_worker_forward.5
= control target key start
LH: loop header
LB: loop body
LE: loop exit
PB: predicated region body
PF: predicated region fallthrough
CT: control target
= control target key end

     0   :  { %v244_v0 = vmov 0.0   ;;  %vm245_vm0 = vmmov 0   ;;  %s384_s1 = inlined_call_operand.vmem [shape: f32[128,128], index: 1, kind: input, shape index: {}]   ;;  %s385_s0 = inlined_call_operand.vmem [shape: f32[40,128], index: 0, kind: input, shape index: {}]   ;;  %s386_s2 = inlined_call_operand.vmem [shape: f32[1,128], index: 2, kind: input, shape index: {}]   ;;  %s387_s3 = inlined_call_operand.vmem [shape: f32[40,128], index: 3, kind: output, shape index: {}]  }
   0x1   :  { %163 = vmatprep.subr.mxu0 %v244_v0  ;;  %v34_v1 = vld [vmem:[%s384_s1 + $0x78] sm:$0xff]  ;;  %210 = vmatprep.subr.mxu1 %v244_v0  ;;  %v33_v2 = vld [vmem:[%s384_s1 + $0x70] sm:$0xff]  ;;  %v32_v3 = vld [vmem:[%s384_s1 + $0x68] sm:$0xff] }
   0x2   :  { %164 = vmatpush3.msra.mxu0 %v34_v1  ;;  %226 = vmatpush3.msra.mxu1 %v34_v1  ;;  %v31_v4 = vld [vmem:[%s384_s1 + $0x60] sm:$0xff]  ;;  %v30_v5 = vld [vmem:[%s384_s1 + $0x58] sm:$0xff]  ;;  %v29_v6 = vld [vmem:[%s384_s1 + $0x50] sm:$0xff] }
   0x3   :  { %165 = vmatprep.subr.mxu0 %v244_v0  ;;  %211 = vmatprep.subr.mxu1 %v244_v0  ;;  %v28_v7 = vld [vmem:[%s384_s1 + $0x48] sm:$0xff]  ;;  %v27_v8 = vld [vmem:[%s384_s1 + $0x40] sm:$0xff]  ;;  %v26_v9 = vld [vmem:[%s384_s1 + $0x38] sm:$0xff] }
   0x4   :  { %166 = vmatpush3.msra.mxu0 %v33_v2  ;;  %227 = vmatpush3.msra.mxu1 %v33_v2  ;;  %v25_v10 = vld [vmem:[%s384_s1 + $0x30] sm:$0xff]  ;;  %v24_v11 = vld [vmem:[%s384_s1 + $0x28] sm:$0xff]  ;;  %v23_v12 = vld [vmem:[%s384_s1 + $0x20] sm:$0xff] }
   0x5   :  { %167 = vmatprep.subr.mxu0 %v244_v0  ;;  %212 = vmatprep.subr.mxu1 %v244_v0  ;;  %v22_v13 = vld [vmem:[%s384_s1 + $0x18] sm:$0xff]  ;;  %v21_v14 = vld [vmem:[%s384_s1 + $0x10] sm:$0xff]  ;;  %v20_v15 = vld [vmem:[%s384_s1 + $0x8] sm:$0xff] }
   0x6   :  { %168 = vmatpush3.msra.mxu0 %v32_v3  ;;  %228 = vmatpush3.msra.mxu1 %v32_v3  ;;  %v19_v16 = vld [vmem:[%s384_s1] sm:$0xff]  ;;  %v17_v18 = vld [vmem:[%s385_s0 + $0x18] sm:$0xff]  ;;  %v15_v19 = vld [vmem:[%s385_s0 + $0x8] sm:$0xff] }
   0x7   :  { %169 = vmatprep.subr.mxu0 %v244_v0  ;;  %213 = vmatprep.subr.mxu1 %v244_v0  ;;  %v14_v17 = vld [vmem:[%s385_s0] sm:$0xff]  ;;  %v16_v21 = vld [vmem:[%s385_s0 + $0x10] sm:$0xff] }
   0x8   :  { %170 = vmatpush3.msra.mxu0 %v31_v4  ;;  %229 = vmatpush3.msra.mxu1 %v31_v4  ;;  %v18_v20 = vld [vmem:[%s385_s0 + $0x20] sm:$0xff] }
   0x9   :  { %171 = vmatprep.subr.mxu0 %v244_v0  ;;  %214 = vmatprep.subr.mxu1 %v244_v0  ;;  %v141_v22 = vld [vmem:[%s386_s2] ss:$0 sm:$0xff] }
   0xa   :  { %172 = vmatpush3.msra.mxu0 %v30_v5  ;;  %230 = vmatpush3.msra.mxu1 %v30_v5 }
   0xb   :  { %173 = vmatprep.subr.mxu0 %v244_v0  ;;  %215 = vmatprep.subr.mxu1 %v244_v0 }
   0xc   :  { %174 = vmatpush3.msra.mxu0 %v29_v6  ;;  %231 = vmatpush3.msra.mxu1 %v29_v6 }
   0xd   :  { %175 = vmatprep.subr.mxu0 %v244_v0  ;;  %216 = vmatprep.subr.mxu1 %v244_v0 }
   0xe   :  { %176 = vmatpush3.msra.mxu0 %v28_v7  ;;  %232 = vmatpush3.msra.mxu1 %v28_v7 }
   0xf   :  { %177 = vmatprep.subr.mxu0 %v244_v0  ;;  %217 = vmatprep.subr.mxu1 %v244_v0 }
  0x10   :  { %178 = vmatpush3.msra.mxu0 %v27_v8  ;;  %233 = vmatpush3.msra.mxu1 %v27_v8 }
  0x11   :  { %179 = vmatprep.subr.mxu0 %v244_v0  ;;  %218 = vmatprep.subr.mxu1 %v244_v0 }
  0x12   :  { %180 = vmatpush3.msra.mxu0 %v26_v9  ;;  %234 = vmatpush3.msra.mxu1 %v26_v9 }
  0x13   :  { %181 = vmatprep.subr.mxu0 %v244_v0  ;;  %219 = vmatprep.subr.mxu1 %v244_v0 }
  0x14   :  { %182 = vmatpush3.msra.mxu0 %v25_v10  ;;  %235 = vmatpush3.msra.mxu1 %v25_v10 }
  0x15   :  { %183 = vmatprep.subr.mxu0 %v244_v0  ;;  %220 = vmatprep.subr.mxu1 %v244_v0 }
  0x16   :  { %184 = vmatpush3.msra.mxu0 %v24_v11  ;;  %236 = vmatpush3.msra.mxu1 %v24_v11 }
  0x17   :  { %185 = vmatprep.subr.mxu0 %v244_v0  ;;  %221 = vmatprep.subr.mxu1 %v244_v0 }
  0x18   :  { %186 = vmatpush3.msra.mxu0 %v23_v12  ;;  %237 = vmatpush3.msra.mxu1 %v23_v12 }
  0x19   :  { %187 = vmatprep.subr.mxu0 %v244_v0  ;;  %222 = vmatprep.subr.mxu1 %v244_v0 }
  0x1a   :  { %188 = vmatpush3.msra.mxu0 %v22_v13  ;;  %238 = vmatpush3.msra.mxu1 %v22_v13 }
  0x1b   :  { %189 = vmatprep.subr.mxu0 %v244_v0  ;;  %223 = vmatprep.subr.mxu1 %v244_v0 }
  0x1c   :  { %190 = vmatpush3.msra.mxu0 %v21_v14  ;;  %239 = vmatpush3.msra.mxu1 %v21_v14 }
  0x1d   :  { %191 = vmatprep.subr.mxu0 %v244_v0  ;;  %224 = vmatprep.subr.mxu1 %v244_v0 }
  0x1e   :  { %192 = vmatpush3.msra.mxu0 %v20_v15  ;;  %240 = vmatpush3.msra.mxu1 %v20_v15 }
  0x1f   :  { %193 = vmatprep.subr.mxu0 %v244_v0  ;;  %195 = vmatprep.mubr.msk.f32.mxu0 %vm245_vm0, %v244_v0 }
  0x20   :  { %194 = vmatpush3.msra.mxu0 %v19_v16  ;;  %225 = vmatprep.subr.mxu1 %v244_v0 }
  0x21   :  { %196 = vmatmul.mubr.f32.vlgmr.msra.gmra.mxu0 %v14_v17  ;;  %241 = vmatpush3.msra.mxu1 %v19_v16 }
  0x22   :  { %204 = vmatprep.mubr.msk.f32.mxu1 %vm245_vm0, %v244_v0  ;;  %198 = vmatprep.mubr.msk.f32.mxu0 %vm245_vm0, %v244_v0 }
  0x23   :  { %205 = vmatmul.mubr.f32.vlgmr.msra.gmra.mxu1 %v17_v18 }
  0x24   :  { %207 = vmatprep.mubr.msk.f32.mxu1 %vm245_vm0, %v244_v0 }
  0x25   :  { %199 = vmatmul.mubr.f32.gmra.mxu0 %v15_v19 }
  0x26   :  { %201 = vmatprep.mubr.msk.f32.mxu0 %vm245_vm0, %v244_v0 }
  0x27   :  { %208 = vmatmul.mubr.f32.gmra.mxu1 %v18_v20 }
  0x29   :  { %202 = vmatmul.mubr.f32.gmra.mxu0 %v16_v21 }
  0xe1   :  { %v108_v23 = vpop.f32.mrf.mxu0 }
  0xe2   :  { %v109_v24 = vadd.f32 %v141_v22, %v108_v23 }
  0xe3   :  { %v197_v25 = vpop.f32.mrf.mxu0  ;;  %v123_v26 = vpop.f32.mrf.mxu1 }
  0xe4   :  { %132 = vst [vmem:[%s387_s3] sm:$0xff] %v109_v24  ;;  %v124_v27 = vadd.f32 %v141_v22, %v123_v26 }
  0xe5   :  { %v113_v28 = vpop.f32.mrf.mxu0  ;;  %v206_v29 = vpop.f32.mrf.mxu1 }
  0xe6   :  { %135 = vst [vmem:[%s387_s3 + $0x18] sm:$0xff] %v124_v27  ;;  %v114_v30 = vadd.f32 %v141_v22, %v113_v28 }
  0xe7   :  { %v200_v31 = vpop.f32.mrf.mxu0  ;;  %v128_v32 = vpop.f32.mrf.mxu1 }
  0xe8   :  { %133 = vst [vmem:[%s387_s3 + $0x8] sm:$0xff] %v114_v30  ;;  %v129_v33 = vadd.f32 %v141_v22, %v128_v32 }
  0xe9   :  { %v118_v34 = vpop.f32.mrf.mxu0  ;;  %v209_v35 = vpop.f32.mrf.mxu1 }
  0xea   :  { %136 = vst [vmem:[%s387_s3 + $0x20] sm:$0xff] %v129_v33  ;;  %v119_v36 = vadd.f32 %v141_v22, %v118_v34 }
  0xeb   :  { %v203_v37 = vpop.f32.mrf.mxu0 }
  0xec   :  { %134 = vst [vmem:[%s387_s3 + $0x10] sm:$0xff] %v119_v36 }

// kernel: feudal_worker_forward.3
= control target key start
LH: loop header
LB: loop body
LE: loop exit
PB: predicated region body
PF: predicated region fallthrough
CT: control target
= control target key end

     0   :  { %vm55_vm0 = vcmask 1045504   ;;  %vm165_vm1 = vcmask 1041408   ;;  %v640_v0 = vmov 0.0   ;;  %vm39_vm2 = vcmask 48128   ;;  %s1022_s3 = inlined_call_operand.vmem [shape: f32[6,128], index: 3, kind: input, shape index: {}]   ;;  %s1023_s2 = inlined_call_operand.vmem [shape: f32[10,128], index: 2, kind: input, shape index: {}]   ;;  %s1024_s1 = inlined_call_operand.vmem [shape: f32[40,6], index: 1, kind: input, shape index: {}]   ;;  %s1025_s0 = inlined_call_operand.vmem [shape: f32[40,10], index: 0, kind: input, shape index: {}]   ;;  %s1026_s5 = inlined_call_operand.vmem [shape: f32[128,512], index: 5, kind: input, shape index: {}]   ;;  %s1027_s4 = inlined_call_operand.vmem [shape: f32[1,128], index: 4, kind: input, shape index: {}]   ;;  %s1028_s6 = inlined_call_operand.vmem [shape: f32[1,512], index: 6, kind: input, shape index: {}]   ;;  %s1029_s7 = inlined_call_operand.vmem [shape: f32[40,512], index: 7, kind: output, shape index: {}]  }
   0x1   :  { %602 = vmatprep.subr.mxu0 %v640_v0  ;;  %619 = vmatprep.subr.mxu1 %v640_v0  ;;  %v38_v1 = vld [vmem:[%s1022_s3] sm:$0x3f]  ;;  %v32_v2 = vld [vmem:[%s1023_s2 + $0x8] sm:$0x3]  ;;  %vm641_vm3 = vmmov 0   ;;  %vm149_vm4 = vcmask 80896  }
   0x2   :  { %v33_v3 = vld [vmem:[%s1024_s1] sm:$0xff]  ;;  %603 = vmatpush3.msk.msra.mxu0 %vm55_vm0, %v38_v1  ;;  %604 = vmatprep.mubr.msk.f32.mxu0 %vm641_vm3, %v640_v0  ;;  %v34_v6 = vld [vmem:[%s1024_s1 + $0x8] sm:$0xff]  ;;  %v339_v8 = vld [vmem:[%s1026_s5 + $0x1f8] sm:$0xff] }
   0x3   :  { %v31_v4 = vld [vmem:[%s1023_s2] sm:$0xff]  ;;  %620 = vmatpush3.msk.msra.mxu1 %vm165_vm1, %v32_v2  ;;  %605 = vmatmul.mubr.msk.f32.vlgmr.msra.gmra.mxu0 %vm39_vm2, %v33_v3  ;;  %v337_v7 = vld [vmem:[%s1026_s5 + $0x1e8] sm:$0xff]  ;;  %v338_v10 = vld [vmem:[%s1026_s5 + $0x1f0] sm:$0xff] }
   0x4   :  { %v26_v5 = vld [vmem:[%s1025_s0] sm:$0xff]  ;;  %621 = vmatprep.subr.mxu1 %v640_v0  ;;  %623 = vmatprep.mubr.msk.f32.mxu1 %vm641_vm3, %v640_v0  ;;  %v27_v11 = vld [vmem:[%s1025_s0 + $0x8] sm:$0xff]  ;;  %v35_v13 = vld [vmem:[%s1024_s1 + $0x10] sm:$0xff] }
   0x5   :  { %622 = vmatpush3.msra.mxu1 %v31_v4  ;;  %607 = vmatprep.mubr.msk.f32.mxu0 %vm641_vm3, %v640_v0  ;;  %v336_v9 = vld [vmem:[%s1026_s5 + $0x1e0] sm:$0xff]  ;;  %v333_v12 = vld [vmem:[%s1026_s5 + $0x1c8] sm:$0xff]  ;;  %v335_v14 = vld [vmem:[%s1026_s5 + $0x1d8] sm:$0xff] }
   0x6   :  { %624 = vmatmul.mubr.msk.f32.vlgmr.msra.gmra.mxu1 %vm149_vm4, %v26_v5  ;;  %362 = vmatprep.subr.mxu0 %v337_v7  ;;  %v332_v15 = vld [vmem:[%s1026_s5 + $0x1c0] sm:$0xff]  ;;  %v334_v16 = vld [vmem:[%s1026_s5 + $0x1d0] sm:$0xff]  ;;  %v329_v18 = vld [vmem:[%s1026_s5 + $0x1a8] sm:$0xff] }
   0x7   :  { %608 = vmatmul.mubr.msk.f32.gmra.mxu0 %vm39_vm2, %v34_v6  ;;  %626 = vmatprep.mubr.msk.f32.mxu1 %vm641_vm3, %v640_v0  ;;  %v28_v17 = vld [vmem:[%s1025_s0 + $0x10] sm:$0xff]  ;;  %v36_v19 = vld [vmem:[%s1024_s1 + $0x18] sm:$0xff]  ;;  %v328_v21 = vld [vmem:[%s1026_s5 + $0x1a0] sm:$0xff] }
   0x8   :  { %610 = vmatprep.mubr.msk.f32.mxu0 %vm641_vm3, %v640_v0  ;;  %457 = vmatprep.subr.mxu1 %v339_v8  ;;  %v331_v20 = vld [vmem:[%s1026_s5 + $0x1b8] sm:$0xff]  ;;  %v330_v22 = vld [vmem:[%s1026_s5 + $0x1b0] sm:$0xff]  ;;  %v325_v24 = vld [vmem:[%s1026_s5 + $0x188] sm:$0xff] }
   0x9   :  { %363 = vmatpush1.msra.mxu0 %v336_v9  ;;  %458 = vmatpush1.msra.mxu1 %v338_v10  ;;  %v29_v23 = vld [vmem:[%s1025_s0 + $0x18] sm:$0xff]  ;;  %v37_v25 = vld [vmem:[%s1024_s1 + $0x20] sm:$0xff]  ;;  %v326_v28 = vld [vmem:[%s1026_s5 + $0x190] sm:$0xff] }
   0xa   :  { %627 = vmatmul.mubr.msk.f32.gmra.mxu1 %vm149_vm4, %v27_v11  ;;  %364 = vmatprep.subr.mxu0 %v333_v12  ;;  %v327_v26 = vld [vmem:[%s1026_s5 + $0x198] sm:$0xff]  ;;  %v324_v27 = vld [vmem:[%s1026_s5 + $0x180] sm:$0xff]  ;;  %v321_v29 = vld [vmem:[%s1026_s5 + $0x168] sm:$0xff] }
   0xb   :  { %611 = vmatmul.mubr.msk.f32.gmra.mxu0 %vm39_vm2, %v35_v13  ;;  %629 = vmatprep.mubr.msk.f32.mxu1 %vm641_vm3, %v640_v0  ;;  %v30_v30 = vld [vmem:[%s1025_s0 + $0x20] sm:$0xff]  ;;  %v323_v31 = vld [vmem:[%s1026_s5 + $0x178] sm:$0xff]  ;;  %v322_v33 = vld [vmem:[%s1026_s5 + $0x170] sm:$0xff] }
   0xc   :  { %613 = vmatprep.mubr.msk.f32.mxu0 %vm641_vm3, %v640_v0  ;;  %459 = vmatprep.subr.mxu1 %v335_v14  ;;  %v320_v32 = vld [vmem:[%s1026_s5 + $0x160] sm:$0xff]  ;;  %v317_v34 = vld [vmem:[%s1026_s5 + $0x148] sm:$0xff]  ;;  %v319_v35 = vld [vmem:[%s1026_s5 + $0x158] sm:$0xff] }
   0xd   :  { %365 = vmatpush1.msra.mxu0 %v332_v15  ;;  %460 = vmatpush1.msra.mxu1 %v334_v16  ;;  %v316_v36 = vld [vmem:[%s1026_s5 + $0x140] sm:$0xff]  ;;  %v318_v37 = vld [vmem:[%s1026_s5 + $0x150] sm:$0xff]  ;;  %v313_v38 = vld [vmem:[%s1026_s5 + $0x128] sm:$0xff] }
   0xe   :  { %630 = vmatmul.mubr.msk.f32.gmra.mxu1 %vm149_vm4, %v28_v17  ;;  %366 = vmatprep.subr.mxu0 %v329_v18  ;;  %v315_v39 = vld [vmem:[%s1026_s5 + $0x138] sm:$0xff]  ;;  %v312_v40 = vld [vmem:[%s1026_s5 + $0x120] sm:$0xff]  ;;  %v314_v41 = vld [vmem:[%s1026_s5 + $0x130] sm:$0xff] }
   0xf   :  { %614 = vmatmul.mubr.msk.f32.gmra.mxu0 %vm39_vm2, %v36_v19  ;;  %632 = vmatprep.mubr.msk.f32.mxu1 %vm641_vm3, %v640_v0  ;;  %v309_v42 = vld [vmem:[%s1026_s5 + $0x108] sm:$0xff]  ;;  %v311_v43 = vld [vmem:[%s1026_s5 + $0x118] sm:$0xff]  ;;  %v308_v44 = vld [vmem:[%s1026_s5 + $0x100] sm:$0xff] }
  0x10   :  { %616 = vmatprep.mubr.msk.f32.mxu0 %vm641_vm3, %v640_v0  ;;  %461 = vmatprep.subr.mxu1 %v331_v20  ;;  %v310_v45 = vld [vmem:[%s1026_s5 + $0x110] sm:$0xff]  ;;  %v305_v46 = vld [vmem:[%s1026_s5 + $0xe8] sm:$0xff]  ;;  %v307_v47 = vld [vmem:[%s1026_s5 + $0xf8] sm:$0xff] }
  0x11   :  { %367 = vmatpush1.msra.mxu0 %v328_v21  ;;  %462 = vmatpush1.msra.mxu1 %v330_v22  ;;  %v304_v48 = vld [vmem:[%s1026_s5 + $0xe0] sm:$0xff]  ;;  %v306_v49 = vld [vmem:[%s1026_s5 + $0xf0] sm:$0xff]  ;;  %v301_v50 = vld [vmem:[%s1026_s5 + $0xc8] sm:$0xff] }
  0x12   :  { %633 = vmatmul.mubr.msk.f32.gmra.mxu1 %vm149_vm4, %v29_v23  ;;  %368 = vmatprep.subr.mxu0 %v325_v24  ;;  %v303_v51 = vld [vmem:[%s1026_s5 + $0xd8] sm:$0xff]  ;;  %v300_v52 = vld [vmem:[%s1026_s5 + $0xc0] sm:$0xff]  ;;  %v302_v53 = vld [vmem:[%s1026_s5 + $0xd0] sm:$0xff] }
  0x13   :  { %617 = vmatmul.mubr.msk.f32.gmra.mxu0 %vm39_vm2, %v37_v25  ;;  %635 = vmatprep.mubr.msk.f32.mxu1 %vm641_vm3, %v640_v0  ;;  %v297_v54 = vld [vmem:[%s1026_s5 + $0xa8] sm:$0xff]  ;;  %v299_v55 = vld [vmem:[%s1026_s5 + $0xb8] sm:$0xff]  ;;  %v296_v56 = vld [vmem:[%s1026_s5 + $0xa0] sm:$0xff] }
  0x14   :  { %463 = vmatprep.subr.mxu1 %v327_v26  ;;  %369 = vmatpush1.msra.mxu0 %v324_v27  ;;  %v298_v57 = vld [vmem:[%s1026_s5 + $0xb0] sm:$0xff]  ;;  %v293_v58 = vld [vmem:[%s1026_s5 + $0x88] sm:$0xff]  ;;  %v295_v59 = vld [vmem:[%s1026_s5 + $0x98] sm:$0xff] }
  0x15   :  { %464 = vmatpush1.msra.mxu1 %v326_v28  ;;  %370 = vmatprep.subr.mxu0 %v321_v29  ;;  %v292_v60 = vld [vmem:[%s1026_s5 + $0x80] sm:$0xff]  ;;  %v294_v61 = vld [vmem:[%s1026_s5 + $0x90] sm:$0xff]  ;;  %v289_v62 = vld [vmem:[%s1026_s5 + $0x68] sm:$0xff] }
  0x16   :  { %636 = vmatmul.mubr.msk.f32.gmra.mxu1 %vm149_vm4, %v30_v30  ;;  %465 = vmatprep.subr.mxu1 %v323_v31  ;;  %v291_v63 = vld [vmem:[%s1026_s5 + $0x78] sm:$0xff]  ;;  %v288_v1 = vld [vmem:[%s1026_s5 + $0x60] sm:$0xff]  ;;  %v290_v2 = vld [vmem:[%s1026_s5 + $0x70] sm:$0xff] }
  0x17   :  { %371 = vmatpush1.msra.mxu0 %v320_v32  ;;  %466 = vmatpush1.msra.mxu1 %v322_v33  ;;  %v285_v3 = vld [vmem:[%s1026_s5 + $0x48] sm:$0xff]  ;;  %v287_v4 = vld [vmem:[%s1026_s5 + $0x58] sm:$0xff]  ;;  %v284_v5 = vld [vmem:[%s1026_s5 + $0x40] sm:$0xff] }
  0x18   :  { %372 = vmatprep.subr.mxu0 %v317_v34  ;;  %467 = vmatprep.subr.mxu1 %v319_v35  ;;  %v286_v6 = vld [vmem:[%s1026_s5 + $0x50] sm:$0xff]  ;;  %v281_v7 = vld [vmem:[%s1026_s5 + $0x28] sm:$0xff]  ;;  %v283_v8 = vld [vmem:[%s1026_s5 + $0x38] sm:$0xff] }
  0x19   :  { %373 = vmatpush1.msra.mxu0 %v316_v36  ;;  %468 = vmatpush1.msra.mxu1 %v318_v37  ;;  %v280_v9 = vld [vmem:[%s1026_s5 + $0x20] sm:$0xff]  ;;  %v282_v10 = vld [vmem:[%s1026_s5 + $0x30] sm:$0xff]  ;;  %v277_v11 = vld [vmem:[%s1026_s5 + $0x8] sm:$0xff] }
  0x1a   :  { %374 = vmatprep.subr.mxu0 %v313_v38  ;;  %469 = vmatprep.subr.mxu1 %v315_v39  ;;  %v279_v12 = vld [vmem:[%s1026_s5 + $0x18] sm:$0xff]  ;;  %v276_v13 = vld [vmem:[%s1026_s5] sm:$0xff]  ;;  %v278_v14 = vld [vmem:[%s1026_s5 + $0x10] sm:$0xff] }
  0x1b   :  { %375 = vmatpush1.msra.mxu0 %v312_v40  ;;  %470 = vmatpush1.msra.mxu1 %v314_v41  ;;  %v588_v18 = vld [vmem:[%s1027_s4] ss:$0 sm:$0xff] }
  0x1c   :  { %376 = vmatprep.subr.mxu0 %v309_v42  ;;  %471 = vmatprep.subr.mxu1 %v311_v43 }
  0x1d   :  { %377 = vmatpush1.msra.mxu0 %v308_v44  ;;  %472 = vmatpush1.msra.mxu1 %v310_v45 }
  0x1e   :  { %378 = vmatprep.subr.mxu0 %v305_v46  ;;  %473 = vmatprep.subr.mxu1 %v307_v47 }
  0x1f   :  { %379 = vmatpush1.msra.mxu0 %v304_v48  ;;  %474 = vmatpush1.msra.mxu1 %v306_v49 }
  0x20   :  { %380 = vmatprep.subr.mxu0 %v301_v50  ;;  %475 = vmatprep.subr.mxu1 %v303_v51  ;;  %v342_v51 = vlaneseq }
  0x21   :  { %381 = vmatpush1.msra.mxu0 %v300_v52  ;;  %476 = vmatpush1.msra.mxu1 %v302_v53 }
  0x22   :  { %382 = vmatprep.subr.mxu0 %v297_v54  ;;  %477 = vmatprep.subr.mxu1 %v299_v55  ;;  %v343_v52 = vshrl.u32 %v342_v51, 7  ;;  %v340_v55 = vld [vmem:[%s1028_s6] sm:$0xf] }
  0x23   :  { %383 = vmatpush1.msra.mxu0 %v296_v56  ;;  %478 = vmatpush1.msra.mxu1 %v298_v57 }
  0x24   :  { %384 = vmatprep.subr.mxu0 %v293_v58  ;;  %479 = vmatprep.subr.mxu1 %v295_v59  ;;  %v344_v53 = vsub.s32 0, %v343_v52  ;;  %v352_v54 = vsub.s32 2, %v343_v52  ;;  %v348_v56 = vsub.s32 1, %v343_v52  ;;  %v356_v57 = vsub.s32 3, %v343_v52 }
  0x25   :  { %426 = vmatprep.mubr.f32.mxu0 %v640_v0  ;;  %521 = vmatprep.mubr.f32.mxu1 %v640_v0 }
  0x26   :  { %385 = vmatpush1.msra.mxu0 %v292_v60  ;;  %480 = vmatpush1.msra.mxu1 %v294_v61  ;;  %v345_v58 = vrot.slane %v340_v55, %v344_v53  ;;  %v353_v59 = vrot.slane %v340_v55, %v352_v54  ;;  %v349_v60 = vrot.slane %v340_v55, %v348_v56 }
  0x27   :  { %386 = vmatprep.subr.mxu0 %v289_v62  ;;  %481 = vmatprep.subr.mxu1 %v291_v63  ;;  %v357_v61 = vrot.slane %v340_v55, %v356_v57 }
  0x28   :  { %387 = vmatpush1.msra.mxu0 %v288_v1  ;;  %482 = vmatpush1.msra.mxu1 %v290_v2 }
  0x29   :  { %388 = vmatprep.subr.mxu0 %v285_v3  ;;  %483 = vmatprep.subr.mxu1 %v287_v4 }
  0x2a   :  { %389 = vmatpush1.msra.mxu0 %v284_v5  ;;  %484 = vmatpush1.msra.mxu1 %v286_v6 }
  0x2b   :  { %390 = vmatprep.subr.mxu0 %v281_v7  ;;  %485 = vmatprep.subr.mxu1 %v283_v8 }
  0x2c   :  { %391 = vmatpush1.msra.mxu0 %v280_v9  ;;  %486 = vmatpush1.msra.mxu1 %v282_v10 }
  0x2d   :  { %392 = vmatprep.subr.mxu0 %v277_v11  ;;  %487 = vmatprep.subr.mxu1 %v279_v12 }
  0x2e   :  { %393 = vmatpush1.msra.mxu0 %v276_v13  ;;  %488 = vmatpush1.msra.mxu1 %v278_v14 }
  0xc3   :  { %v125_v15 = vpop.f32.mrf.mxu0 }
  0xc5   :  { %v606_v16 = vpop.f32.mrf.mxu0 }
  0xc6   :  { %v235_v17 = vpop.f32.mrf.mxu1 }
  0xc7   :  { %v236_v19 = vadd.f32 %v235_v17, %v125_v15  ;;  %v130_v20 = vpop.f32.mrf.mxu0 }
  0xc8   :  { %v625_v21 = vpop.f32.mrf.mxu1 }
  0xc9   :  { %v266_v22 = vadd.f32 %v588_v18, %v236_v19  ;;  %v609_v23 = vpop.f32.mrf.mxu0 }
  0xca   :  { %v240_v24 = vpop.f32.mrf.mxu1 }
  0xcb   :  { %v271_v25 = vmax.f32 %v266_v22, 0.0  ;;  %v241_v26 = vadd.f32 %v240_v24, %v130_v20  ;;  %v135_v27 = vpop.f32.mrf.mxu0 }
  0xcc   :  { %v628_v28 = vpop.f32.mrf.mxu1 }
  0xcd   :  { %v267_v29 = vadd.f32 %v588_v18, %v241_v26  ;;  %427 = vmatmul.mubr.f32.vlgmr.msra.gmra.mxu0 %v271_v25  ;;  %522 = vmatmul.mubr.f32.vlgmr.msra.gmra.mxu1 %v271_v25  ;;  %v612_v30 = vpop.f32.mrf.mxu0 }
  0xce   :  { %v245_v31 = vpop.f32.mrf.mxu1  ;;  %432 = vmatprep.mubr.f32.mxu0 %v640_v0  ;;  %527 = vmatprep.mubr.f32.mxu1 %v640_v0 }
  0xcf   :  { %v272_v32 = vmax.f32 %v267_v29, 0.0  ;;  %v246_v33 = vadd.f32 %v245_v31, %v135_v27  ;;  %v140_v34 = vpop.f32.mrf.mxu0 }
  0xd0   :  { %v631_v35 = vpop.f32.mrf.mxu1 }
  0xd1   :  { %v268_v36 = vadd.f32 %v588_v18, %v246_v33  ;;  %433 = vmatmul.mubr.f32.gmra.mxu0 %v272_v32  ;;  %528 = vmatmul.mubr.f32.gmra.mxu1 %v272_v32  ;;  %v615_v37 = vpop.f32.mrf.mxu0 }
  0xd2   :  { %v250_v38 = vpop.f32.mrf.mxu1  ;;  %438 = vmatprep.mubr.f32.mxu0 %v640_v0  ;;  %533 = vmatprep.mubr.f32.mxu1 %v640_v0 }
  0xd3   :  { %v273_v39 = vmax.f32 %v268_v36, 0.0  ;;  %v251_v40 = vadd.f32 %v250_v38, %v140_v34  ;;  %v145_v41 = vpop.f32.mrf.mxu0 }
  0xd4   :  { %v634_v42 = vpop.f32.mrf.mxu1 }
  0xd5   :  { %v269_v43 = vadd.f32 %v588_v18, %v251_v40  ;;  %439 = vmatmul.mubr.f32.gmra.mxu0 %v273_v39  ;;  %534 = vmatmul.mubr.f32.gmra.mxu1 %v273_v39  ;;  %v618_v44 = vpop.f32.mrf.mxu0 }
  0xd6   :  { %v255_v45 = vpop.f32.mrf.mxu1  ;;  %444 = vmatprep.mubr.f32.mxu0 %v640_v0  ;;  %539 = vmatprep.mubr.f32.mxu1 %v640_v0 }
  0xd7   :  { %v274_v46 = vmax.f32 %v269_v43, 0.0  ;;  %v256_v47 = vadd.f32 %v255_v45, %v145_v41 }
  0xd8   :  { %v637_v48 = vpop.f32.mrf.mxu1 }
  0xd9   :  { %v270_v49 = vadd.f32 %v588_v18, %v256_v47  ;;  %445 = vmatmul.mubr.f32.gmra.mxu0 %v274_v46  ;;  %540 = vmatmul.mubr.f32.gmra.mxu1 %v274_v46 }
  0xda   :  { %450 = vmatprep.mubr.f32.mxu0 %v640_v0  ;;  %545 = vmatprep.mubr.f32.mxu1 %v640_v0 }
  0xdb   :  { %v275_v50 = vmax.f32 %v270_v49, 0.0 }
  0xdd   :  { %451 = vmatmul.mubr.f32.gmra.mxu0 %v275_v50  ;;  %546 = vmatmul.mubr.f32.gmra.mxu1 %v275_v50 }
 0x18d   :  { %v428_v62 = vpop.f32.mrf.mxu0  ;;  %v523_v63 = vpop.f32.mrf.mxu1 }
 0x18e   :  { %v429_v0 = vadd.f32 %v428_v62, %v345_v58  ;;  %v524_v1 = vadd.f32 %v523_v63, %v353_v59 }
 0x18f   :  { %v430_v2 = vpop.f32.mrf.mxu0  ;;  %v525_v3 = vpop.f32.mrf.mxu1 }
 0x190   :  { %552 = vst [vmem:[%s1029_s7] sm:$0xff] %v429_v0  ;;  %554 = vst [vmem:[%s1029_s7 + $0x10] sm:$0xff] %v524_v1  ;;  %v431_v4 = vadd.f32 %v430_v2, %v349_v60  ;;  %v526_v5 = vadd.f32 %v525_v3, %v357_v61 }
 0x191   :  { %v434_v6 = vpop.f32.mrf.mxu0  ;;  %v529_v7 = vpop.f32.mrf.mxu1 }
 0x192   :  { %553 = vst [vmem:[%s1029_s7 + $0x8] sm:$0xff] %v431_v4  ;;  %555 = vst [vmem:[%s1029_s7 + $0x18] sm:$0xff] %v526_v5  ;;  %v435_v8 = vadd.f32 %v434_v6, %v345_v58  ;;  %v530_v9 = vadd.f32 %v529_v7, %v353_v59 }
 0x193   :  { %v436_v10 = vpop.f32.mrf.mxu0  ;;  %v531_v11 = vpop.f32.mrf.mxu1 }
 0x194   :  { %556 = vst [vmem:[%s1029_s7 + $0x20] sm:$0xff] %v435_v8  ;;  %558 = vst [vmem:[%s1029_s7 + $0x30] sm:$0xff] %v530_v9  ;;  %v437_v12 = vadd.f32 %v436_v10, %v349_v60  ;;  %v532_v13 = vadd.f32 %v531_v11, %v357_v61 }
 0x195   :  { %v440_v14 = vpop.f32.mrf.mxu0  ;;  %v535_v15 = vpop.f32.mrf.mxu1 }
 0x196   :  { %557 = vst [vmem:[%s1029_s7 + $0x28] sm:$0xff] %v437_v12  ;;  %559 = vst [vmem:[%s1029_s7 + $0x38] sm:$0xff] %v532_v13  ;;  %v441_v16 = vadd.f32 %v440_v14, %v345_v58  ;;  %v536_v17 = vadd.f32 %v535_v15, %v353_v59 }
 0x197   :  { %v442_v18 = vpop.f32.mrf.mxu0  ;;  %v537_v19 = vpop.f32.mrf.mxu1 }
 0x198   :  { %560 = vst [vmem:[%s1029_s7 + $0x40] sm:$0xff] %v441_v16  ;;  %562 = vst [vmem:[%s1029_s7 + $0x50] sm:$0xff] %v536_v17  ;;  %v443_v20 = vadd.f32 %v442_v18, %v349_v60  ;;  %v538_v21 = vadd.f32 %v537_v19, %v357_v61 }
 0x199   :  { %v446_v22 = vpop.f32.mrf.mxu0  ;;  %v541_v23 = vpop.f32.mrf.mxu1 }
 0x19a   :  { %561 = vst [vmem:[%s1029_s7 + $0x48] sm:$0xff] %v443_v20  ;;  %563 = vst [vmem:[%s1029_s7 + $0x58] sm:$0xff] %v538_v21  ;;  %v447_v24 = vadd.f32 %v446_v22, %v345_v58  ;;  %v542_v25 = vadd.f32 %v541_v23, %v353_v59 }
 0x19b   :  { %v448_v26 = vpop.f32.mrf.mxu0  ;;  %v543_v27 = vpop.f32.mrf.mxu1 }
 0x19c   :  { %564 = vst [vmem:[%s1029_s7 + $0x60] sm:$0xff] %v447_v24  ;;  %566 = vst [vmem:[%s1029_s7 + $0x70] sm:$0xff] %v542_v25  ;;  %v449_v28 = vadd.f32 %v448_v26, %v349_v60  ;;  %v544_v29 = vadd.f32 %v543_v27, %v357_v61 }
 0x19d   :  { %v452_v30 = vpop.f32.mrf.mxu0  ;;  %v547_v31 = vpop.f32.mrf.mxu1 }
 0x19e   :  { %565 = vst [vmem:[%s1029_s7 + $0x68] sm:$0xff] %v449_v28  ;;  %567 = vst [vmem:[%s1029_s7 + $0x78] sm:$0xff] %v544_v29  ;;  %v453_v32 = vadd.f32 %v452_v30, %v345_v58  ;;  %v548_v33 = vadd.f32 %v547_v31, %v353_v59 }
 0x19f   :  { %v454_v34 = vpop.f32.mrf.mxu0  ;;  %v549_v35 = vpop.f32.mrf.mxu1 }
 0x1a0   :  { %568 = vst [vmem:[%s1029_s7 + $0x80] sm:$0xff] %v453_v32  ;;  %570 = vst [vmem:[%s1029_s7 + $0x90] sm:$0xff] %v548_v33  ;;  %v455_v36 = vadd.f32 %v454_v34, %v349_v60  ;;  %v550_v37 = vadd.f32 %v549_v35, %v357_v61 }
 0x1a2   :  { %569 = vst [vmem:[%s1029_s7 + $0x88] sm:$0xff] %v455_v36  ;;  %571 = vst [vmem:[%s1029_s7 + $0x98] sm:$0xff] %v550_v37 }

// kernel: feudal_worker_forward.4
= control target key start
LH: loop header
LB: loop body
LE: loop exit
PB: predicated region body
PF: predicated region fallthrough
CT: control target
= control target key end

     0   :  { %v1899_v3 = vmov 0.0   ;;  %s1892_s3 = inlined_call_operand.vmem [shape: f32[128,512], index: 3, kind: input, shape index: {}]   ;;  %s1893_s1 = inlined_call_operand.vmem [shape: f32[8,128], index: 1, kind: input, shape index: {}]   ;;  %s1894_s0 = inlined_call_operand.vmem [shape: f32[5,8,512], index: 0, kind: input, shape index: {}]   ;;  %s1895_s2 = inlined_call_operand.vmem [shape: f32[8,128], index: 2, kind: input, shape index: {}]   ;;  %s1896_s4 = inlined_call_operand.vmem [shape: f32[5,8,128], index: 4, kind: output, shape index: {0}]   ;;  %s1897_s6 = inlined_call_operand.vmem [shape: f32[8,128], index: 6, kind: output, shape index: {2}]   ;;  %s1898_s5 = inlined_call_operand.vmem [shape: f32[8,128], index: 5, kind: output, shape index: {1}]  }
   0x1   :  { %v1146_v0 = vld [vmem:[%s1892_s3 + $0x1e8] sm:$0xff]  ;;  %v1151_v1 = vld [vmem:[%s1892_s3 + $0x1e0] sm:$0xff]  ;;  %162 = vmatprep.mubr.f32.mxu0 %v1899_v3  ;;  %233 = vmatprep.mubr.f32.mxu1 %v1899_v3  ;;  %v1193_v9 = vld [vmem:[%s1892_s3 + $0x1f8] sm:$0xff] }
   0x2   :  { %1940 = vst [vmem:[#allocation2_spill] sm:$0xff] %v1146_v0  ;;  %v1156_v2 = vld [vmem:[%s1892_s3 + $0x1c8] sm:$0xff]  ;;  %98 = vmatprep.subr.mxu0 %v1146_v0  ;;  %v1164_v4 = vld [vmem:[%s1892_s3 + $0x1c0] sm:$0xff]  ;;  %1941 = vst [vmem:[#allocation3_spill] sm:$0xff] %v1193_v9  ;;  %169 = vmatprep.subr.mxu1 %v1193_v9 }
   0x3   :  { %99 = vmatpush1.msra.mxu0 %v1151_v1  ;;  %v1170_v5 = vld [vmem:[%s1892_s3 + $0x1a8] sm:$0xff]  ;;  %v1176_v6 = vld [vmem:[%s1892_s3 + $0x1a0] sm:$0xff]  ;;  %v1205_v11 = vld [vmem:[%s1892_s3 + $0x1f0] sm:$0xff] }
   0x4   :  { %100 = vmatprep.subr.mxu0 %v1156_v2  ;;  %v1182_v7 = vld [vmem:[%s1892_s3 + $0x188] sm:$0xff]  ;;  %v1188_v8 = vld [vmem:[%s1892_s3 + $0x180] sm:$0xff]  ;;  %170 = vmatpush1.msra.mxu1 %v1205_v11  ;;  %v1217_v13 = vld [vmem:[%s1892_s3 + $0x1d8] sm:$0xff] }
   0x5   :  { %101 = vmatpush1.msra.mxu0 %v1164_v4  ;;  %v1199_v10 = vld [vmem:[%s1892_s3 + $0x168] sm:$0xff]  ;;  %v1211_v12 = vld [vmem:[%s1892_s3 + $0x160] sm:$0xff]  ;;  %v1222_v14 = vld [vmem:[%s1892_s3 + $0x1d0] sm:$0xff]  ;;  %171 = vmatprep.subr.mxu1 %v1217_v13 }
   0x6   :  { %102 = vmatprep.subr.mxu0 %v1170_v5  ;;  %v1228_v15 = vld [vmem:[%s1892_s3 + $0x148] sm:$0xff]  ;;  %v1234_v16 = vld [vmem:[%s1892_s3 + $0x1b8] sm:$0xff]  ;;  %v1240_v17 = vld [vmem:[%s1892_s3 + $0x140] sm:$0xff]  ;;  %172 = vmatpush1.msra.mxu1 %v1222_v14 }
   0x7   :  { %103 = vmatpush1.msra.mxu0 %v1176_v6  ;;  %v1246_v18 = vld [vmem:[%s1892_s3 + $0x1b0] sm:$0xff]  ;;  %v1251_v19 = vld [vmem:[%s1892_s3 + $0x198] sm:$0xff]  ;;  %v1257_v20 = vld [vmem:[%s1892_s3 + $0x128] sm:$0xff]  ;;  %173 = vmatprep.subr.mxu1 %v1234_v16 }
   0x8   :  { %104 = vmatprep.subr.mxu0 %v1182_v7  ;;  %v1263_v21 = vld [vmem:[%s1892_s3 + $0x190] sm:$0xff]  ;;  %v1269_v22 = vld [vmem:[%s1892_s3 + $0x120] sm:$0xff]  ;;  %174 = vmatpush1.msra.mxu1 %v1246_v18  ;;  %v1275_v23 = vld [vmem:[%s1892_s3 + $0x178] sm:$0xff] }
   0x9   :  { %105 = vmatpush1.msra.mxu0 %v1188_v8  ;;  %v1281_v24 = vld [vmem:[%s1892_s3 + $0x108] sm:$0xff]  ;;  %175 = vmatprep.subr.mxu1 %v1251_v19  ;;  %v1287_v25 = vld [vmem:[%s1892_s3 + $0x170] sm:$0xff]  ;;  %v1293_v26 = vld [vmem:[%s1892_s3 + $0x100] sm:$0xff] }
   0xa   :  { %106 = vmatprep.subr.mxu0 %v1199_v10  ;;  %176 = vmatpush1.msra.mxu1 %v1263_v21  ;;  %v1299_v27 = vld [vmem:[%s1892_s3 + $0x158] sm:$0xff]  ;;  %v1305_v28 = vld [vmem:[%s1892_s3 + $0xe8] sm:$0xff]  ;;  %v1311_v29 = vld [vmem:[%s1892_s3 + $0x150] sm:$0xff] }
   0xb   :  { %107 = vmatpush1.msra.mxu0 %v1211_v12  ;;  %177 = vmatprep.subr.mxu1 %v1275_v23  ;;  %v1317_v30 = vld [vmem:[%s1892_s3 + $0xe0] sm:$0xff]  ;;  %v1323_v31 = vld [vmem:[%s1892_s3 + $0x138] sm:$0xff]  ;;  %v1329_v32 = vld [vmem:[%s1892_s3 + $0xc8] sm:$0xff] }
   0xc   :  { %108 = vmatprep.subr.mxu0 %v1228_v15  ;;  %178 = vmatpush1.msra.mxu1 %v1287_v25  ;;  %v1335_v33 = vld [vmem:[%s1892_s3 + $0x130] sm:$0xff]  ;;  %v1341_v34 = vld [vmem:[%s1892_s3 + $0xc0] sm:$0xff]  ;;  %v1347_v35 = vld [vmem:[%s1892_s3 + $0x118] sm:$0xff] }
   0xd   :  { %109 = vmatpush1.msra.mxu0 %v1240_v17  ;;  %179 = vmatprep.subr.mxu1 %v1299_v27  ;;  %v1353_v36 = vld [vmem:[%s1892_s3 + $0xa8] sm:$0xff]  ;;  %v1359_v37 = vld [vmem:[%s1892_s3 + $0x110] sm:$0xff]  ;;  %v1365_v38 = vld [vmem:[%s1892_s3 + $0xa0] sm:$0xff] }
   0xe   :  { %110 = vmatprep.subr.mxu0 %v1257_v20  ;;  %180 = vmatpush1.msra.mxu1 %v1311_v29  ;;  %v1371_v39 = vld [vmem:[%s1892_s3 + $0xf8] sm:$0xff]  ;;  %v1377_v40 = vld [vmem:[%s1892_s3 + $0x88] sm:$0xff]  ;;  %v1383_v41 = vld [vmem:[%s1892_s3 + $0xf0] sm:$0xff] }
   0xf   :  { %111 = vmatpush1.msra.mxu0 %v1269_v22  ;;  %181 = vmatprep.subr.mxu1 %v1323_v31  ;;  %v1389_v42 = vld [vmem:[%s1892_s3 + $0x80] sm:$0xff]  ;;  %v1395_v43 = vld [vmem:[%s1892_s3 + $0xd8] sm:$0xff]  ;;  %v1401_v44 = vld [vmem:[%s1892_s3 + $0x68] sm:$0xff] }
  0x10   :  { %112 = vmatprep.subr.mxu0 %v1281_v24  ;;  %182 = vmatpush1.msra.mxu1 %v1335_v33  ;;  %1942 = vst [vmem:[#allocation4_spill] sm:$0xff] %v1401_v44  ;;  %v1407_v45 = vld [vmem:[%s1892_s3 + $0xd0] sm:$0xff]  ;;  %v1413_v46 = vld [vmem:[%s1892_s3 + $0x60] sm:$0xff]  ;;  %v1419_v47 = vld [vmem:[%s1892_s3 + $0xb8] sm:$0xff] }
  0x11   :  { %113 = vmatpush1.msra.mxu0 %v1293_v26  ;;  %183 = vmatprep.subr.mxu1 %v1347_v35  ;;  %1943 = vst [vmem:[#allocation5_spill] sm:$0xff] %v1413_v46  ;;  %v1425_v48 = vld [vmem:[%s1892_s3 + $0x48] sm:$0xff]  ;;  %v1431_v49 = vld [vmem:[%s1892_s3 + $0xb0] sm:$0xff]  ;;  %v1437_v50 = vld [vmem:[%s1892_s3 + $0x40] sm:$0xff] }
  0x12   :  { %114 = vmatprep.subr.mxu0 %v1305_v28  ;;  %184 = vmatpush1.msra.mxu1 %v1359_v37  ;;  %1944 = vst [vmem:[#allocation6_spill] sm:$0xff] %v1425_v48  ;;  %1945 = vst [vmem:[#allocation7_spill] sm:$0xff] %v1437_v50  ;;  %v1443_v51 = vld [vmem:[%s1892_s3 + $0x98] sm:$0xff]  ;;  %v1449_v52 = vld [vmem:[%s1892_s3 + $0x28] sm:$0xff] }
  0x13   :  { %115 = vmatpush1.msra.mxu0 %v1317_v30  ;;  %185 = vmatprep.subr.mxu1 %v1371_v39  ;;  %1946 = vst [vmem:[#allocation8_spill] sm:$0xff] %v1449_v52  ;;  %v1455_v53 = vld [vmem:[%s1892_s3 + $0x90] sm:$0xff]  ;;  %v1461_v54 = vld [vmem:[%s1892_s3 + $0x20] sm:$0xff]  ;;  %v1467_v55 = vld [vmem:[%s1892_s3 + $0x78] sm:$0xff] }
  0x14   :  { %116 = vmatprep.subr.mxu0 %v1329_v32  ;;  %186 = vmatpush1.msra.mxu1 %v1383_v41  ;;  %1947 = vst [vmem:[#allocation9_spill] sm:$0xff] %v1461_v54  ;;  %1948 = vst [vmem:[#allocation10_spill] sm:$0xff] %v1467_v55  ;;  %v1473_v56 = vld [vmem:[%s1892_s3 + $0x8] sm:$0xff]  ;;  %v1479_v57 = vld [vmem:[%s1892_s3 + $0x70] sm:$0xff] }
  0x15   :  { %117 = vmatpush1.msra.mxu0 %v1341_v34  ;;  %187 = vmatprep.subr.mxu1 %v1395_v43  ;;  %1949 = vst [vmem:[#allocation11_spill] sm:$0xff] %v1473_v56  ;;  %1950 = vst [vmem:[#allocation12_spill] sm:$0xff] %v1479_v57  ;;  %v1485_v58 = vld [vmem:[%s1892_s3] sm:$0xff]  ;;  %v1491_v59 = vld [vmem:[%s1892_s3 + $0x58] sm:$0xff] }
  0x16   :  { %118 = vmatprep.subr.mxu0 %v1353_v36  ;;  %188 = vmatpush1.msra.mxu1 %v1407_v45  ;;  %1951 = vst [vmem:[#allocation13_spill] sm:$0xff] %v1485_v58  ;;  %1952 = vst [vmem:[#allocation14_spill] sm:$0xff] %v1491_v59  ;;  %v24_v60 = vld [vmem:[%s1893_s1] sm:$0xff]  ;;  %v1501_v61 = vld [vmem:[%s1892_s3 + $0x50] sm:$0xff] }
  0x17   :  { %119 = vmatpush1.msra.mxu0 %v1365_v38  ;;  %189 = vmatprep.subr.mxu1 %v1419_v47  ;;  %1953 = vst [vmem:[#allocation15_spill] sm:$0xff] %v1501_v61  ;;  %v1508_v62 = vld [vmem:[%s1892_s3 + $0x38] sm:$0xff]  ;;  %v1515_v63 = vld [vmem:[%s1892_s3 + $0x30] sm:$0xff] }
  0x18   :  { %120 = vmatprep.subr.mxu0 %v1377_v40  ;;  %190 = vmatpush1.msra.mxu1 %v1431_v49  ;;  %1954 = vst [vmem:[#allocation16_spill] sm:$0xff] %v1508_v62  ;;  %1955 = vst [vmem:[#allocation17_spill] sm:$0xff] %v1515_v63  ;;  %v1521_v3 = vld [vmem:[%s1892_s3 + $0x18] sm:$0xff] }
  0x19   :  { %121 = vmatpush1.msra.mxu0 %v1389_v42  ;;  %191 = vmatprep.subr.mxu1 %v1443_v51  ;;  %1956 = vst [vmem:[#allocation18_spill] sm:$0xff] %v1521_v3 }
  0x1a   :  { %122 = vmatprep.subr.mxu0 %v1401_v44  ;;  %192 = vmatpush1.msra.mxu1 %v1455_v53 }
  0x1b   :  { %123 = vmatpush1.msra.mxu0 %v1413_v46  ;;  %193 = vmatprep.subr.mxu1 %v1467_v55 }
  0x1c   :  { %124 = vmatprep.subr.mxu0 %v1425_v48  ;;  %194 = vmatpush1.msra.mxu1 %v1479_v57 }
  0x1d   :  { %125 = vmatpush1.msra.mxu0 %v1437_v50  ;;  %195 = vmatprep.subr.mxu1 %v1491_v59 }
  0x1e   :  { %126 = vmatprep.subr.mxu0 %v1449_v52  ;;  %196 = vmatpush1.msra.mxu1 %v1501_v61 }
  0x1f   :  { %127 = vmatpush1.msra.mxu0 %v1461_v54  ;;  %197 = vmatprep.subr.mxu1 %v1508_v62 }
  0x20   :  { %128 = vmatprep.subr.mxu0 %v1473_v56  ;;  %198 = vmatpush1.msra.mxu1 %v1515_v63 }
  0x21   :  { %129 = vmatpush1.msra.mxu0 %v1485_v58  ;;  %v1527_v58 = vld [vmem:[%s1892_s3 + $0x10] sm:$0xff]  ;;  %199 = vmatprep.subr.mxu1 %v1521_v3 }
  0x22   :  { %163 = vmatmul.mubr.f32.vlgmr.msra.gmra.mxu0 %v24_v60  ;;  %1957 = vst [vmem:[#allocation19_spill] sm:$0xff] %v1527_v58  ;;  %274 = vmatprep.subr.mxu0 %v1146_v0 }
  0x23   :  { %275 = vmatpush1.msra.mxu0 %v1151_v1  ;;  %200 = vmatpush1.msra.mxu1 %v1527_v58 }
  0x24   :  { %276 = vmatprep.subr.mxu0 %v1156_v2  ;;  %234 = vmatmul.mubr.f32.vlgmr.msra.gmra.mxu1 %v24_v60  ;;  %v1958_v60 = vld [vmem:[#allocation13_spill] sm:$0xff] }
  0x25   :  { %277 = vmatpush1.msra.mxu0 %v1164_v4  ;;  %345 = vmatprep.subr.mxu1 %v1193_v9 }
  0x26   :  { %346 = vmatpush1.msra.mxu1 %v1205_v11  ;;  %278 = vmatprep.subr.mxu0 %v1170_v5 }
  0x27   :  { %347 = vmatprep.subr.mxu1 %v1217_v13  ;;  %279 = vmatpush1.msra.mxu0 %v1176_v6 }
  0x28   :  { %348 = vmatpush1.msra.mxu1 %v1222_v14  ;;  %280 = vmatprep.subr.mxu0 %v1182_v7 }
  0x29   :  { %349 = vmatprep.subr.mxu1 %v1234_v16  ;;  %281 = vmatpush1.msra.mxu0 %v1188_v8 }
  0x2a   :  { %350 = vmatpush1.msra.mxu1 %v1246_v18  ;;  %282 = vmatprep.subr.mxu0 %v1199_v10 }
  0x2b   :  { %351 = vmatprep.subr.mxu1 %v1251_v19  ;;  %283 = vmatpush1.msra.mxu0 %v1211_v12 }
  0x2c   :  { %352 = vmatpush1.msra.mxu1 %v1263_v21  ;;  %284 = vmatprep.subr.mxu0 %v1228_v15 }
  0x2d   :  { %353 = vmatprep.subr.mxu1 %v1275_v23  ;;  %285 = vmatpush1.msra.mxu0 %v1240_v17 }
  0x2e   :  { %354 = vmatpush1.msra.mxu1 %v1287_v25  ;;  %286 = vmatprep.subr.mxu0 %v1257_v20 }
  0x2f   :  { %355 = vmatprep.subr.mxu1 %v1299_v27  ;;  %287 = vmatpush1.msra.mxu0 %v1269_v22 }
  0x30   :  { %356 = vmatpush1.msra.mxu1 %v1311_v29  ;;  %288 = vmatprep.subr.mxu0 %v1281_v24 }
  0x31   :  { %357 = vmatprep.subr.mxu1 %v1323_v31  ;;  %289 = vmatpush1.msra.mxu0 %v1293_v26 }
  0x32   :  { %358 = vmatpush1.msra.mxu1 %v1335_v33  ;;  %290 = vmatprep.subr.mxu0 %v1305_v28 }
  0x33   :  { %359 = vmatprep.subr.mxu1 %v1347_v35  ;;  %291 = vmatpush1.msra.mxu0 %v1317_v30 }
  0x34   :  { %360 = vmatpush1.msra.mxu1 %v1359_v37  ;;  %292 = vmatprep.subr.mxu0 %v1329_v32 }
  0x35   :  { %361 = vmatprep.subr.mxu1 %v1371_v39  ;;  %293 = vmatpush1.msra.mxu0 %v1341_v34 }
  0x36   :  { %362 = vmatpush1.msra.mxu1 %v1383_v41  ;;  %294 = vmatprep.subr.mxu0 %v1353_v36 }
  0x37   :  { %363 = vmatprep.subr.mxu1 %v1395_v43  ;;  %295 = vmatpush1.msra.mxu0 %v1365_v38 }
  0x38   :  { %364 = vmatpush1.msra.mxu1 %v1407_v45  ;;  %296 = vmatprep.subr.mxu0 %v1377_v40 }
  0x39   :  { %365 = vmatprep.subr.mxu1 %v1419_v47  ;;  %297 = vmatpush1.msra.mxu0 %v1389_v42 }
  0x3a   :  { %366 = vmatpush1.msra.mxu1 %v1431_v49  ;;  %298 = vmatprep.subr.mxu0 %v1401_v44 }
  0x3b   :  { %367 = vmatprep.subr.mxu1 %v1443_v51  ;;  %299 = vmatpush1.msra.mxu0 %v1413_v46 }
  0x3c   :  { %368 = vmatpush1.msra.mxu1 %v1455_v53  ;;  %300 = vmatprep.subr.mxu0 %v1425_v48  ;;  %v1959_v48 = vmov 0.0  }
  0x3d   :  { %369 = vmatprep.subr.mxu1 %v1467_v55  ;;  %301 = vmatpush1.msra.mxu0 %v1437_v50 }
  0x3e   :  { %370 = vmatpush1.msra.mxu1 %v1479_v57  ;;  %302 = vmatprep.subr.mxu0 %v1449_v52 }
  0x3f   :  { %371 = vmatprep.subr.mxu1 %v1491_v59  ;;  %303 = vmatpush1.msra.mxu0 %v1461_v54 }
  0x40   :  { %372 = vmatpush1.msra.mxu1 %v1501_v61  ;;  %304 = vmatprep.subr.mxu0 %v1473_v56  ;;  %v94_v56 = vld [vmem:[%s1894_s0] sm:$0xff]  ;;  %v96_v61 = vld [vmem:[%s1894_s0 + $0x10] sm:$0xff] }
  0x41   :  { %373 = vmatprep.subr.mxu1 %v1508_v62  ;;  %305 = vmatpush1.msra.mxu0 %v1958_v60  ;;  %v95_v60 = vld [vmem:[%s1894_s0 + $0x8] sm:$0xff] }
  0x42   :  { %374 = vmatpush1.msra.mxu1 %v1515_v63  ;;  %338 = vmatprep.mubr.f32.mxu0 %v1959_v48 }
  0x43   :  { %375 = vmatprep.subr.mxu1 %v1521_v3  ;;  %409 = vmatprep.mubr.f32.mxu1 %v1959_v48 }
  0x44   :  { %376 = vmatpush1.msra.mxu1 %v1527_v58  ;;  %451 = vmatprep.subr.mxu0 %v1146_v0 }
  0x45   :  { %522 = vmatprep.subr.mxu1 %v1193_v9  ;;  %v97_v9 = vld [vmem:[%s1894_s0 + $0x18] sm:$0xff] }
  0xe2   :  { %v164_v54 = vpop.f32.mrf.mxu0 }
  0xe3   :  { %v240_v63 = vadd.f32 %v164_v54, %v94_v56 }
  0xe4   :  { %v166_v62 = vpop.f32.mrf.mxu0  ;;  %v235_v58 = vpop.f32.mrf.mxu1 }
  0xe5   :  { %v991_v3 = vmul.f32 -1.442695, %v240_v63  ;;  %v241_v52 = vadd.f32 %v166_v62, %v95_v60  ;;  %v242_v59 = vadd.f32 %v235_v58, %v96_v61  ;;  %v26_v60 = vld [vmem:[%s1895_s2] sm:$0xff]  ;;  %v1962_v61 = vld [vmem:[#allocation12_spill] sm:$0xff] }
  0xe6   :  { %v237_v0 = vpop.f32.mrf.mxu1 }
  0xe7   :  { %1027 = vpow2.f32 %v991_v3  ;;  %v992_v48 = vmul.f32 -1.442695, %v241_v52  ;;  %v243_v50 = vadd.f32 %v237_v0, %v97_v9 }
  0xe9   :  { %1029 = vpow2.f32 %v992_v48  ;;  %v993_v57 = vmul.f32 -1.442695, %v243_v50 }
  0xea   :  { %1031 = vtanh.f32 %v242_v59 }
  0xeb   :  { %1033 = vpow2.f32 %v993_v57 }
  0xf4   :  { %v1028_v54 = vpop.eup %1027 }
  0xf5   :  { %v247_v56 = vadd.f32 1.0, %v1028_v54  ;;  %v1963_v54 = vld [vmem:[#allocation6_spill] sm:$0xff] }
  0xf6   :  { %v1030_v62 = vpop.eup %1029 }
  0xf7   :  { %1035 = vrcp.f32 %v247_v56  ;;  %v253_v3 = vadd.f32 1.0, %v1030_v62  ;;  %v1032_v48 = vpop.eup %1031  ;;  %v1964_v56 = vld [vmem:[#allocation14_spill] sm:$0xff]  ;;  %v1965_v62 = vld [vmem:[#allocation7_spill] sm:$0xff] }
  0xf8   :  { %v1034_v52 = vpop.eup %1033 }
  0xf9   :  { %1037 = vrcp.f32 %v253_v3  ;;  %v260_v55 = vadd.f32 1.0, %v1034_v52  ;;  %v1966_v3 = vld [vmem:[#allocation15_spill] sm:$0xff]  ;;  %v1968_v52 = vld [vmem:[#allocation16_spill] sm:$0xff] }
  0xfb   :  { %1039 = vrcp.f32 %v260_v55  ;;  %v1961_v55 = vld [vmem:[#allocation5_spill] sm:$0xff] }
 0x104   :  { %v1036_v63 = vpop.eup %1035 }
 0x105   :  { %v264_v9 = vmul.f32 %v1036_v63, %v1032_v48  ;;  %v1967_v48 = vld [vmem:[#allocation8_spill] sm:$0xff]  ;;  %v1969_v63 = vld [vmem:[#allocation9_spill] sm:$0xff] }
 0x106   :  { %v1038_v46 = vpop.eup %1037 }
 0x107   :  { %v263_v0 = vmul.f32 %v1038_v46, %v26_v60  ;;  %v1960_v46 = vld [vmem:[#allocation10_spill] sm:$0xff]  ;;  %v1970_v60 = vld [vmem:[#allocation17_spill] sm:$0xff] }
 0x108   :  { %v1040_v57 = vpop.eup %1039 }
 0x109   :  { %v1615_v50 = vadd.f32 %v264_v9, %v263_v0  ;;  %v1971_v0 = vld [vmem:[#allocation11_spill] sm:$0xff]  ;;  %v1972_v9 = vld [vmem:[#allocation18_spill] sm:$0xff] }
 0x10b   :  { %1041 = vtanh.f32 %v1615_v50 }
 0x118   :  { %v1042_v58 = vpop.eup %1041 }
 0x119   :  { %v267_v59 = vmul.f32 %v1042_v58, %v1040_v57  ;;  %v1973_v57 = vld [vmem:[#allocation13_spill] sm:$0xff]  ;;  %v1974_v58 = vmov 0.0  }
 0x11b   :  { %268 = vst [vmem:[%s1896_s4] sm:$0xff] %v267_v59  ;;  %339 = vmatmul.mubr.f32.vlgmr.msra.gmra.mxu0 %v267_v59  ;;  %410 = vmatmul.mubr.f32.vlgmr.msra.gmra.mxu1 %v267_v59  ;;  %v1975_v59 = vld [vmem:[#allocation19_spill] sm:$0xff] }
 0x11c   :  { %452 = vmatpush1.msra.mxu0 %v1151_v1  ;;  %523 = vmatpush1.msra.mxu1 %v1205_v11 }
 0x11d   :  { %453 = vmatprep.subr.mxu0 %v1156_v2  ;;  %524 = vmatprep.subr.mxu1 %v1217_v13 }
 0x11e   :  { %454 = vmatpush1.msra.mxu0 %v1164_v4  ;;  %525 = vmatpush1.msra.mxu1 %v1222_v14 }
 0x11f   :  { %455 = vmatprep.subr.mxu0 %v1170_v5  ;;  %526 = vmatprep.subr.mxu1 %v1234_v16 }
 0x120   :  { %456 = vmatpush1.msra.mxu0 %v1176_v6  ;;  %527 = vmatpush1.msra.mxu1 %v1246_v18 }
 0x121   :  { %457 = vmatprep.subr.mxu0 %v1182_v7  ;;  %528 = vmatprep.subr.mxu1 %v1251_v19 }
 0x122   :  { %458 = vmatpush1.msra.mxu0 %v1188_v8  ;;  %529 = vmatpush1.msra.mxu1 %v1263_v21 }
 0x123   :  { %459 = vmatprep.subr.mxu0 %v1199_v10  ;;  %530 = vmatprep.subr.mxu1 %v1275_v23 }
 0x124   :  { %460 = vmatpush1.msra.mxu0 %v1211_v12  ;;  %531 = vmatpush1.msra.mxu1 %v1287_v25 }
 0x125   :  { %461 = vmatprep.subr.mxu0 %v1228_v15  ;;  %532 = vmatprep.subr.mxu1 %v1299_v27 }
 0x126   :  { %462 = vmatpush1.msra.mxu0 %v1240_v17  ;;  %533 = vmatpush1.msra.mxu1 %v1311_v29 }
 0x127   :  { %463 = vmatprep.subr.mxu0 %v1257_v20  ;;  %534 = vmatprep.subr.mxu1 %v1323_v31 }
 0x128   :  { %464 = vmatpush1.msra.mxu0 %v1269_v22  ;;  %535 = vmatpush1.msra.mxu1 %v1335_v33 }
 0x129   :  { %465 = vmatprep.subr.mxu0 %v1281_v24  ;;  %536 = vmatprep.subr.mxu1 %v1347_v35 }
 0x12a   :  { %466 = vmatpush1.msra.mxu0 %v1293_v26  ;;  %537 = vmatpush1.msra.mxu1 %v1359_v37 }
 0x12b   :  { %467 = vmatprep.subr.mxu0 %v1305_v28  ;;  %538 = vmatprep.subr.mxu1 %v1371_v39 }
 0x12c   :  { %468 = vmatpush1.msra.mxu0 %v1317_v30  ;;  %539 = vmatpush1.msra.mxu1 %v1383_v41 }
 0x12d   :  { %469 = vmatprep.subr.mxu0 %v1329_v32  ;;  %540 = vmatprep.subr.mxu1 %v1395_v43 }
 0x12e   :  { %470 = vmatpush1.msra.mxu0 %v1341_v34  ;;  %541 = vmatpush1.msra.mxu1 %v1407_v45 }
 0x12f   :  { %471 = vmatprep.subr.mxu0 %v1353_v36  ;;  %542 = vmatprep.subr.mxu1 %v1419_v47 }
 0x130   :  { %472 = vmatpush1.msra.mxu0 %v1365_v38  ;;  %543 = vmatpush1.msra.mxu1 %v1431_v49 }
 0x131   :  { %473 = vmatprep.subr.mxu0 %v1377_v40  ;;  %544 = vmatprep.subr.mxu1 %v1443_v51 }
 0x132   :  { %474 = vmatpush1.msra.mxu0 %v1389_v42  ;;  %545 = vmatpush1.msra.mxu1 %v1455_v53 }
 0x133   :  { %475 = vmatprep.subr.mxu0 %v1401_v44  ;;  %546 = vmatprep.subr.mxu1 %v1960_v46 }
 0x134   :  { %476 = vmatpush1.msra.mxu0 %v1961_v55  ;;  %547 = vmatpush1.msra.mxu1 %v1962_v61 }
 0x135   :  { %477 = vmatprep.subr.mxu0 %v1963_v54  ;;  %548 = vmatprep.subr.mxu1 %v1964_v56  ;;  %v996_v54 = vld [vmem:[%s1894_s0 + $0x30] sm:$0xff] }
 0x136   :  { %478 = vmatpush1.msra.mxu0 %v1965_v62  ;;  %549 = vmatpush1.msra.mxu1 %v1966_v3  ;;  %v1976_v3 = vld [vmem:[#allocation2_spill] sm:$0xff] }
 0x137   :  { %479 = vmatprep.subr.mxu0 %v1967_v48  ;;  %550 = vmatprep.subr.mxu1 %v1968_v52  ;;  %v1977_v48 = vld [vmem:[#allocation3_spill] sm:$0xff] }
 0x138   :  { %480 = vmatpush1.msra.mxu0 %v1969_v63  ;;  %551 = vmatpush1.msra.mxu1 %v1970_v60  ;;  %v994_v60 = vld [vmem:[%s1894_s0 + $0x20] sm:$0xff] }
 0x139   :  { %481 = vmatprep.subr.mxu0 %v1971_v0  ;;  %552 = vmatprep.subr.mxu1 %v1972_v9  ;;  %v995_v9 = vld [vmem:[%s1894_s0 + $0x28] sm:$0xff] }
 0x13a   :  { %482 = vmatpush1.msra.mxu0 %v1973_v57  ;;  %515 = vmatprep.mubr.f32.mxu0 %v1974_v58 }
 0x13b   :  { %553 = vmatpush1.msra.mxu1 %v1975_v59  ;;  %586 = vmatprep.mubr.f32.mxu1 %v1974_v58 }
 0x13c   :  { %628 = vmatprep.subr.mxu0 %v1976_v3  ;;  %699 = vmatprep.subr.mxu1 %v1977_v48  ;;  %v997_v48 = vld [vmem:[%s1894_s0 + $0x38] sm:$0xff] }
 0x1db   :  { %v340_v63 = vpop.f32.mrf.mxu0  ;;  %v411_v59 = vpop.f32.mrf.mxu1 }
 0x1dc   :  { %v416_v57 = vadd.f32 %v994_v60, %v340_v63  ;;  %v418_v63 = vadd.f32 %v996_v54, %v411_v59  ;;  %v1981_v59 = vld [vmem:[#allocation12_spill] sm:$0xff] }
 0x1dd   :  { %v342_v0 = vpop.f32.mrf.mxu0  ;;  %v413_v3 = vpop.f32.mrf.mxu1 }
 0x1de   :  { %v998_v52 = vmul.f32 -1.442695, %v416_v57  ;;  %v417_v62 = vadd.f32 %v995_v9, %v342_v0  ;;  %v419_v56 = vadd.f32 %v997_v48, %v413_v3 }
 0x1e0   :  { %1043 = vpow2.f32 %v998_v52  ;;  %v999_v58 = vmul.f32 -1.442695, %v417_v62  ;;  %v1000_v61 = vmul.f32 -1.442695, %v419_v56  ;;  %v1980_v56 = vld [vmem:[#allocation5_spill] sm:$0xff] }
 0x1e2   :  { %1045 = vpow2.f32 %v999_v58 }
 0x1e3   :  { %1047 = vpow2.f32 %v1000_v61 }
 0x1ed   :  { %v1044_v55 = vpop.eup %1043 }
 0x1ee   :  { %v423_v60 = vadd.f32 1.0, %v1044_v55 }
 0x1ef   :  { %v1046_v57 = vpop.eup %1045 }
 0x1f0   :  { %1049 = vrcp.f32 %v423_v60  ;;  %v429_v52 = vadd.f32 1.0, %v1046_v57  ;;  %v1048_v62 = vpop.eup %1047  ;;  %v1983_v60 = vld [vmem:[#allocation14_spill] sm:$0xff]  ;;  %v1984_v57 = vld [vmem:[#allocation7_spill] sm:$0xff] }
 0x1f1   :  { %1051 = vtanh.f32 %v418_v63  ;;  %v436_v46 = vadd.f32 1.0, %v1048_v62  ;;  %v1982_v63 = vld [vmem:[#allocation6_spill] sm:$0xff]  ;;  %v1986_v62 = vld [vmem:[#allocation8_spill] sm:$0xff] }
 0x1f2   :  { %1053 = vrcp.f32 %v429_v52  ;;  %v1985_v52 = vld [vmem:[#allocation15_spill] sm:$0xff] }
 0x1f3   :  { %1055 = vrcp.f32 %v436_v46  ;;  %v1979_v46 = vld [vmem:[#allocation10_spill] sm:$0xff] }
 0x1fd   :  { %v1050_v0 = vpop.eup %1049 }
 0x1fe   :  { %v1052_v9 = vpop.eup %1051 }
 0x1ff   :  { %v1054_v58 = vpop.eup %1053  ;;  %v440_v3 = vmul.f32 %v1052_v9, %v1050_v0  ;;  %v1987_v0 = vld [vmem:[#allocation16_spill] sm:$0xff]  ;;  %v1988_v9 = vld [vmem:[#allocation9_spill] sm:$0xff] }
 0x200   :  { %v439_v48 = vmul.f32 %v1054_v58, %v1615_v50  ;;  %v1056_v55 = vpop.eup %1055  ;;  %v1978_v50 = vld [vmem:[#allocation4_spill] sm:$0xff]  ;;  %v1989_v58 = vld [vmem:[#allocation17_spill] sm:$0xff] }
 0x202   :  { %v1700_v44 = vadd.f32 %v440_v3, %v439_v48  ;;  %v1990_v3 = vld [vmem:[#allocation11_spill] sm:$0xff]  ;;  %v1991_v48 = vld [vmem:[#allocation18_spill] sm:$0xff] }
 0x204   :  { %1057 = vtanh.f32 %v1700_v44 }
 0x211   :  { %v1058_v54 = vpop.eup %1057 }
 0x212   :  { %v443_v61 = vmul.f32 %v1058_v54, %v1056_v55  ;;  %v1992_v55 = vld [vmem:[#allocation13_spill] sm:$0xff]  ;;  %v1993_v54 = vmov 0.0  }
 0x214   :  { %1001 = vst [vmem:[%s1896_s4 + $0x8] sm:$0xff] %v443_v61  ;;  %516 = vmatmul.mubr.f32.vlgmr.msra.gmra.mxu0 %v443_v61  ;;  %587 = vmatmul.mubr.f32.vlgmr.msra.gmra.mxu1 %v443_v61  ;;  %v1994_v61 = vld [vmem:[#allocation19_spill] sm:$0xff] }
 0x215   :  { %629 = vmatpush1.msra.mxu0 %v1151_v1  ;;  %700 = vmatpush1.msra.mxu1 %v1205_v11 }
 0x216   :  { %630 = vmatprep.subr.mxu0 %v1156_v2  ;;  %701 = vmatprep.subr.mxu1 %v1217_v13 }
 0x217   :  { %631 = vmatpush1.msra.mxu0 %v1164_v4  ;;  %702 = vmatpush1.msra.mxu1 %v1222_v14 }
 0x218   :  { %632 = vmatprep.subr.mxu0 %v1170_v5  ;;  %703 = vmatprep.subr.mxu1 %v1234_v16 }
 0x219   :  { %633 = vmatpush1.msra.mxu0 %v1176_v6  ;;  %704 = vmatpush1.msra.mxu1 %v1246_v18 }
 0x21a   :  { %634 = vmatprep.subr.mxu0 %v1182_v7  ;;  %705 = vmatprep.subr.mxu1 %v1251_v19 }
 0x21b   :  { %635 = vmatpush1.msra.mxu0 %v1188_v8  ;;  %706 = vmatpush1.msra.mxu1 %v1263_v21 }
 0x21c   :  { %636 = vmatprep.subr.mxu0 %v1199_v10  ;;  %707 = vmatprep.subr.mxu1 %v1275_v23 }
 0x21d   :  { %637 = vmatpush1.msra.mxu0 %v1211_v12  ;;  %708 = vmatpush1.msra.mxu1 %v1287_v25 }
 0x21e   :  { %638 = vmatprep.subr.mxu0 %v1228_v15  ;;  %709 = vmatprep.subr.mxu1 %v1299_v27 }
 0x21f   :  { %639 = vmatpush1.msra.mxu0 %v1240_v17  ;;  %710 = vmatpush1.msra.mxu1 %v1311_v29 }
 0x220   :  { %640 = vmatprep.subr.mxu0 %v1257_v20  ;;  %711 = vmatprep.subr.mxu1 %v1323_v31 }
 0x221   :  { %641 = vmatpush1.msra.mxu0 %v1269_v22  ;;  %712 = vmatpush1.msra.mxu1 %v1335_v33 }
 0x222   :  { %642 = vmatprep.subr.mxu0 %v1281_v24  ;;  %713 = vmatprep.subr.mxu1 %v1347_v35 }
 0x223   :  { %643 = vmatpush1.msra.mxu0 %v1293_v26  ;;  %714 = vmatpush1.msra.mxu1 %v1359_v37 }
 0x224   :  { %644 = vmatprep.subr.mxu0 %v1305_v28  ;;  %715 = vmatprep.subr.mxu1 %v1371_v39 }
 0x225   :  { %645 = vmatpush1.msra.mxu0 %v1317_v30  ;;  %716 = vmatpush1.msra.mxu1 %v1383_v41 }
 0x226   :  { %646 = vmatprep.subr.mxu0 %v1329_v32  ;;  %717 = vmatprep.subr.mxu1 %v1395_v43 }
 0x227   :  { %647 = vmatpush1.msra.mxu0 %v1341_v34  ;;  %718 = vmatpush1.msra.mxu1 %v1407_v45 }
 0x228   :  { %648 = vmatprep.subr.mxu0 %v1353_v36  ;;  %719 = vmatprep.subr.mxu1 %v1419_v47 }
 0x229   :  { %649 = vmatpush1.msra.mxu0 %v1365_v38  ;;  %720 = vmatpush1.msra.mxu1 %v1431_v49 }
 0x22a   :  { %650 = vmatprep.subr.mxu0 %v1377_v40  ;;  %721 = vmatprep.subr.mxu1 %v1443_v51 }
 0x22b   :  { %651 = vmatpush1.msra.mxu0 %v1389_v42  ;;  %722 = vmatpush1.msra.mxu1 %v1455_v53 }
 0x22c   :  { %652 = vmatprep.subr.mxu0 %v1978_v50  ;;  %723 = vmatprep.subr.mxu1 %v1979_v46 }
 0x22d   :  { %653 = vmatpush1.msra.mxu0 %v1980_v56  ;;  %724 = vmatpush1.msra.mxu1 %v1981_v59 }
 0x22e   :  { %654 = vmatprep.subr.mxu0 %v1982_v63  ;;  %725 = vmatprep.subr.mxu1 %v1983_v60  ;;  %v1004_v63 = vld [vmem:[%s1894_s0 + $0x50] sm:$0xff] }
 0x22f   :  { %655 = vmatpush1.msra.mxu0 %v1984_v57  ;;  %726 = vmatpush1.msra.mxu1 %v1985_v52  ;;  %v1995_v52 = vld [vmem:[#allocation2_spill] sm:$0xff] }
 0x230   :  { %656 = vmatprep.subr.mxu0 %v1986_v62  ;;  %727 = vmatprep.subr.mxu1 %v1987_v0  ;;  %v1996_v62 = vld [vmem:[#allocation3_spill] sm:$0xff] }
 0x231   :  { %657 = vmatpush1.msra.mxu0 %v1988_v9  ;;  %728 = vmatpush1.msra.mxu1 %v1989_v58  ;;  %v1002_v58 = vld [vmem:[%s1894_s0 + $0x40] sm:$0xff] }
 0x232   :  { %658 = vmatprep.subr.mxu0 %v1990_v3  ;;  %729 = vmatprep.subr.mxu1 %v1991_v48  ;;  %v1003_v48 = vld [vmem:[%s1894_s0 + $0x48] sm:$0xff] }
 0x233   :  { %659 = vmatpush1.msra.mxu0 %v1992_v55  ;;  %692 = vmatprep.mubr.f32.mxu0 %v1993_v54 }
 0x234   :  { %730 = vmatpush1.msra.mxu1 %v1994_v61  ;;  %763 = vmatprep.mubr.f32.mxu1 %v1993_v54 }
 0x235   :  { %805 = vmatprep.subr.mxu0 %v1995_v52  ;;  %876 = vmatprep.subr.mxu1 %v1996_v62  ;;  %v1005_v52 = vld [vmem:[%s1894_s0 + $0x58] sm:$0xff] }
 0x2d4   :  { %v517_v9 = vpop.f32.mrf.mxu0  ;;  %v588_v61 = vpop.f32.mrf.mxu1 }
 0x2d5   :  { %v593_v55 = vadd.f32 %v1002_v58, %v517_v9  ;;  %v595_v9 = vadd.f32 %v1004_v63, %v588_v61 }
 0x2d6   :  { %v519_v3 = vpop.f32.mrf.mxu0  ;;  %v590_v62 = vpop.f32.mrf.mxu1 }
 0x2d7   :  { %v1006_v0 = vmul.f32 -1.442695, %v593_v55  ;;  %v594_v57 = vadd.f32 %v1003_v48, %v519_v3  ;;  %v596_v60 = vadd.f32 %v1005_v52, %v590_v62 }
 0x2d9   :  { %1059 = vpow2.f32 %v1006_v0  ;;  %v1007_v54 = vmul.f32 -1.442695, %v594_v57  ;;  %v1008_v59 = vmul.f32 -1.442695, %v596_v60 }
 0x2db   :  { %1061 = vpow2.f32 %v1007_v54 }
 0x2dc   :  { %1063 = vpow2.f32 %v1008_v59 }
 0x2e6   :  { %v1060_v56 = vpop.eup %1059 }
 0x2e7   :  { %v600_v58 = vadd.f32 1.0, %v1060_v56 }
 0x2e8   :  { %v1062_v55 = vpop.eup %1061 }
 0x2e9   :  { %1065 = vrcp.f32 %v600_v58  ;;  %v606_v0 = vadd.f32 1.0, %v1062_v55  ;;  %v1064_v57 = vpop.eup %1063 }
 0x2ea   :  { %1067 = vtanh.f32 %v595_v9  ;;  %v613_v46 = vadd.f32 1.0, %v1064_v57 }
 0x2eb   :  { %1069 = vrcp.f32 %v606_v0 }
 0x2ec   :  { %1071 = vrcp.f32 %v613_v46  ;;  %v1018_v46 = vld [vmem:[%s1894_s0 + $0x80] sm:$0xff] }
 0x2f6   :  { %v1066_v3 = vpop.eup %1065 }
 0x2f7   :  { %v1068_v48 = vpop.eup %1067 }
 0x2f8   :  { %v1070_v54 = vpop.eup %1069  ;;  %v617_v52 = vmul.f32 %v1068_v48, %v1066_v3  ;;  %v1021_v3 = vld [vmem:[%s1894_s0 + $0x98] sm:$0xff] }
 0x2f9   :  { %v616_v62 = vmul.f32 %v1070_v54, %v1700_v44  ;;  %v1072_v56 = vpop.eup %1071 }
 0x2fb   :  { %v1785_v50 = vadd.f32 %v617_v52, %v616_v62  ;;  %v1020_v52 = vld [vmem:[%s1894_s0 + $0x90] sm:$0xff] }
 0x2fd   :  { %1073 = vtanh.f32 %v1785_v50 }
 0x30a   :  { %v1074_v63 = vpop.eup %1073 }
 0x30b   :  { %v620_v59 = vmul.f32 %v1074_v63, %v1072_v56 }
 0x30d   :  { %1009 = vst [vmem:[%s1896_s4 + $0x10] sm:$0xff] %v620_v59  ;;  %693 = vmatmul.mubr.f32.vlgmr.msra.gmra.mxu0 %v620_v59  ;;  %764 = vmatmul.mubr.f32.vlgmr.msra.gmra.mxu1 %v620_v59 }
 0x30e   :  { %806 = vmatpush1.msra.mxu0 %v1151_v1  ;;  %877 = vmatpush1.msra.mxu1 %v1205_v11  ;;  %v1997_v1 = vld [vmem:[#allocation4_spill] sm:$0xff] }
 0x30f   :  { %807 = vmatprep.subr.mxu0 %v1156_v2  ;;  %878 = vmatprep.subr.mxu1 %v1217_v13  ;;  %v1998_v2 = vld [vmem:[#allocation10_spill] sm:$0xff]  ;;  %v2005_v11 = vld [vmem:[#allocation8_spill] sm:$0xff]  ;;  %v2007_v13 = vld [vmem:[#allocation9_spill] sm:$0xff] }
 0x310   :  { %808 = vmatpush1.msra.mxu0 %v1164_v4  ;;  %879 = vmatpush1.msra.mxu1 %v1222_v14  ;;  %v1999_v4 = vld [vmem:[#allocation5_spill] sm:$0xff] }
 0x311   :  { %809 = vmatprep.subr.mxu0 %v1170_v5  ;;  %880 = vmatprep.subr.mxu1 %v1234_v16  ;;  %v2000_v5 = vld [vmem:[#allocation12_spill] sm:$0xff]  ;;  %v2008_v14 = vld [vmem:[#allocation17_spill] sm:$0xff]  ;;  %v2010_v16 = vld [vmem:[#allocation18_spill] sm:$0xff] }
 0x312   :  { %810 = vmatpush1.msra.mxu0 %v1176_v6  ;;  %881 = vmatpush1.msra.mxu1 %v1246_v18  ;;  %v2001_v6 = vld [vmem:[#allocation6_spill] sm:$0xff]  ;;  %v2012_v18 = vmov 0.0  }
 0x313   :  { %811 = vmatprep.subr.mxu0 %v1182_v7  ;;  %882 = vmatprep.subr.mxu1 %v1251_v19  ;;  %v2002_v7 = vld [vmem:[#allocation14_spill] sm:$0xff]  ;;  %v2013_v19 = vld [vmem:[#allocation19_spill] sm:$0xff] }
 0x314   :  { %812 = vmatpush1.msra.mxu0 %v1188_v8  ;;  %883 = vmatpush1.msra.mxu1 %v1263_v21  ;;  %v2003_v8 = vld [vmem:[#allocation7_spill] sm:$0xff] }
 0x315   :  { %813 = vmatprep.subr.mxu0 %v1199_v10  ;;  %884 = vmatprep.subr.mxu1 %v1275_v23  ;;  %v2004_v10 = vld [vmem:[#allocation15_spill] sm:$0xff] }
 0x316   :  { %814 = vmatpush1.msra.mxu0 %v1211_v12  ;;  %885 = vmatpush1.msra.mxu1 %v1287_v25  ;;  %v2006_v12 = vld [vmem:[#allocation16_spill] sm:$0xff] }
 0x317   :  { %815 = vmatprep.subr.mxu0 %v1228_v15  ;;  %886 = vmatprep.subr.mxu1 %v1299_v27  ;;  %v2009_v15 = vld [vmem:[#allocation11_spill] sm:$0xff] }
 0x318   :  { %816 = vmatpush1.msra.mxu0 %v1240_v17  ;;  %887 = vmatpush1.msra.mxu1 %v1311_v29  ;;  %v2011_v17 = vld [vmem:[#allocation13_spill] sm:$0xff] }
 0x319   :  { %817 = vmatprep.subr.mxu0 %v1257_v20  ;;  %888 = vmatprep.subr.mxu1 %v1323_v31  ;;  %v1010_v20 = vld [vmem:[%s1894_s0 + $0x60] sm:$0xff]  ;;  %v1013_v29 = vld [vmem:[%s1894_s0 + $0x78] sm:$0xff] }
 0x31a   :  { %818 = vmatpush1.msra.mxu0 %v1269_v22  ;;  %889 = vmatpush1.msra.mxu1 %v1335_v33  ;;  %v1011_v22 = vld [vmem:[%s1894_s0 + $0x68] sm:$0xff] }
 0x31b   :  { %819 = vmatprep.subr.mxu0 %v1281_v24  ;;  %890 = vmatprep.subr.mxu1 %v1347_v35 }
 0x31c   :  { %820 = vmatpush1.msra.mxu0 %v1293_v26  ;;  %891 = vmatpush1.msra.mxu1 %v1359_v37 }
 0x31d   :  { %821 = vmatprep.subr.mxu0 %v1305_v28  ;;  %892 = vmatprep.subr.mxu1 %v1371_v39 }
 0x31e   :  { %822 = vmatpush1.msra.mxu0 %v1317_v30  ;;  %893 = vmatpush1.msra.mxu1 %v1383_v41 }
 0x31f   :  { %823 = vmatprep.subr.mxu0 %v1329_v32  ;;  %894 = vmatprep.subr.mxu1 %v1395_v43  ;;  %v1012_v32 = vld [vmem:[%s1894_s0 + $0x70] sm:$0xff] }
 0x320   :  { %824 = vmatpush1.msra.mxu0 %v1341_v34  ;;  %895 = vmatpush1.msra.mxu1 %v1407_v45 }
 0x321   :  { %825 = vmatprep.subr.mxu0 %v1353_v36  ;;  %896 = vmatprep.subr.mxu1 %v1419_v47 }
 0x322   :  { %826 = vmatpush1.msra.mxu0 %v1365_v38  ;;  %897 = vmatpush1.msra.mxu1 %v1431_v49 }
 0x323   :  { %827 = vmatprep.subr.mxu0 %v1377_v40  ;;  %898 = vmatprep.subr.mxu1 %v1443_v51 }
 0x324   :  { %828 = vmatpush1.msra.mxu0 %v1389_v42  ;;  %899 = vmatpush1.msra.mxu1 %v1455_v53 }
 0x325   :  { %829 = vmatprep.subr.mxu0 %v1997_v1  ;;  %900 = vmatprep.subr.mxu1 %v1998_v2 }
 0x326   :  { %830 = vmatpush1.msra.mxu0 %v1999_v4  ;;  %901 = vmatpush1.msra.mxu1 %v2000_v5 }
 0x327   :  { %831 = vmatprep.subr.mxu0 %v2001_v6  ;;  %902 = vmatprep.subr.mxu1 %v2002_v7 }
 0x328   :  { %832 = vmatpush1.msra.mxu0 %v2003_v8  ;;  %903 = vmatpush1.msra.mxu1 %v2004_v10 }
 0x329   :  { %833 = vmatprep.subr.mxu0 %v2005_v11  ;;  %904 = vmatprep.subr.mxu1 %v2006_v12 }
 0x32a   :  { %834 = vmatpush1.msra.mxu0 %v2007_v13  ;;  %905 = vmatpush1.msra.mxu1 %v2008_v14 }
 0x32b   :  { %835 = vmatprep.subr.mxu0 %v2009_v15  ;;  %906 = vmatprep.subr.mxu1 %v2010_v16 }
 0x32c   :  { %836 = vmatpush1.msra.mxu0 %v2011_v17  ;;  %869 = vmatprep.mubr.f32.mxu0 %v2012_v18 }
 0x32d   :  { %907 = vmatpush1.msra.mxu1 %v2013_v19  ;;  %940 = vmatprep.mubr.f32.mxu1 %v2012_v18 }
 0x3cd   :  { %v694_v21 = vpop.f32.mrf.mxu0  ;;  %v765_v27 = vpop.f32.mrf.mxu1 }
 0x3ce   :  { %v770_v23 = vadd.f32 %v1010_v20, %v694_v21  ;;  %v772_v35 = vadd.f32 %v1012_v32, %v765_v27 }
 0x3cf   :  { %v696_v24 = vpop.f32.mrf.mxu0  ;;  %v767_v30 = vpop.f32.mrf.mxu1 }
 0x3d0   :  { %v1014_v25 = vmul.f32 -1.442695, %v770_v23  ;;  %v771_v26 = vadd.f32 %v1011_v22, %v696_v24  ;;  %v773_v31 = vadd.f32 %v1013_v29, %v767_v30 }
 0x3d2   :  { %1075 = vpow2.f32 %v1014_v25  ;;  %v1015_v28 = vmul.f32 -1.442695, %v771_v26  ;;  %v1016_v33 = vmul.f32 -1.442695, %v773_v31 }
 0x3d4   :  { %1077 = vpow2.f32 %v1015_v28 }
 0x3d5   :  { %1079 = vpow2.f32 %v1016_v33 }
 0x3df   :  { %v1076_v34 = vpop.eup %1075 }
 0x3e0   :  { %v777_v36 = vadd.f32 1.0, %v1076_v34 }
 0x3e1   :  { %v1078_v37 = vpop.eup %1077 }
 0x3e2   :  { %1081 = vrcp.f32 %v777_v36  ;;  %v783_v38 = vadd.f32 1.0, %v1078_v37  ;;  %v1080_v39 = vpop.eup %1079 }
 0x3e3   :  { %1083 = vtanh.f32 %v772_v35  ;;  %v790_v43 = vadd.f32 1.0, %v1080_v39 }
 0x3e4   :  { %1085 = vrcp.f32 %v783_v38 }
 0x3e5   :  { %1087 = vrcp.f32 %v790_v43 }
 0x3ef   :  { %v1082_v40 = vpop.eup %1081 }
 0x3f0   :  { %v1084_v41 = vpop.eup %1083 }
 0x3f1   :  { %v1086_v42 = vpop.eup %1085  ;;  %v794_v44 = vmul.f32 %v1084_v41, %v1082_v40 }
 0x3f2   :  { %v793_v45 = vmul.f32 %v1086_v42, %v1785_v50  ;;  %v1088_v49 = vpop.eup %1087  ;;  %v1019_v50 = vld [vmem:[%s1894_s0 + $0x88] sm:$0xff] }
 0x3f4   :  { %v795_v47 = vadd.f32 %v794_v44, %v793_v45 }
 0x3f6   :  { %1089 = vtanh.f32 %v795_v47 }
 0x403   :  { %v1090_v51 = vpop.eup %1089 }
 0x404   :  { %v797_v53 = vmul.f32 %v1090_v51, %v1088_v49 }
 0x406   :  { %1017 = vst [vmem:[%s1896_s4 + $0x18] sm:$0xff] %v797_v53  ;;  %870 = vmatmul.mubr.f32.vlgmr.msra.gmra.mxu0 %v797_v53  ;;  %941 = vmatmul.mubr.f32.vlgmr.msra.gmra.mxu1 %v797_v53 }
 0x4c6   :  { %v871_v60 = vpop.f32.mrf.mxu0  ;;  %v942_v0 = vpop.f32.mrf.mxu1 }
 0x4c7   :  { %v947_v61 = vadd.f32 %v1018_v46, %v871_v60  ;;  %v949_v63 = vadd.f32 %v1020_v52, %v942_v0 }
 0x4c8   :  { %v873_v9 = vpop.f32.mrf.mxu0  ;;  %v944_v48 = vpop.f32.mrf.mxu1 }
 0x4c9   :  { %v1022_v58 = vmul.f32 -1.442695, %v947_v61  ;;  %v948_v55 = vadd.f32 %v1019_v50, %v873_v9  ;;  %v950_v54 = vadd.f32 %v1021_v3, %v944_v48 }
 0x4cb   :  { %1091 = vpow2.f32 %v1022_v58  ;;  %v1023_v57 = vmul.f32 -1.442695, %v948_v55  ;;  %v1024_v62 = vmul.f32 -1.442695, %v950_v54 }
 0x4cd   :  { %1093 = vpow2.f32 %v1023_v57 }
 0x4ce   :  { %1095 = vpow2.f32 %v1024_v62 }
 0x4d8   :  { %v1092_v56 = vpop.eup %1091 }
 0x4d9   :  { %v954_v59 = vadd.f32 1.0, %v1092_v56 }
 0x4da   :  { %v1094_v1 = vpop.eup %1093 }
 0x4db   :  { %1097 = vrcp.f32 %v954_v59  ;;  %v960_v2 = vadd.f32 1.0, %v1094_v1  ;;  %v1096_v4 = vpop.eup %1095 }
 0x4dc   :  { %1099 = vtanh.f32 %v949_v63  ;;  %v967_v8 = vadd.f32 1.0, %v1096_v4 }
 0x4dd   :  { %1101 = vrcp.f32 %v960_v2 }
 0x4de   :  { %1103 = vrcp.f32 %v967_v8 }
 0x4e8   :  { %v1098_v5 = vpop.eup %1097 }
 0x4e9   :  { %v1100_v6 = vpop.eup %1099 }
 0x4ea   :  { %v1102_v7 = vpop.eup %1101  ;;  %v971_v10 = vmul.f32 %v1100_v6, %v1098_v5 }
 0x4eb   :  { %v970_v11 = vmul.f32 %v1102_v7, %v795_v47  ;;  %v1104_v13 = vpop.eup %1103 }
 0x4ed   :  { %v972_v12 = vadd.f32 %v971_v10, %v970_v11 }
 0x4ef   :  { %1105 = vtanh.f32 %v972_v12  ;;  %978 = vst [vmem:[%s1897_s6] sm:$0xff] %v972_v12 }
 0x4fc   :  { %v1106_v14 = vpop.eup %1105 }
 0x4fd   :  { %v974_v15 = vmul.f32 %v1106_v14, %v1104_v13 }
 0x4ff   :  { %1025 = vst [vmem:[%s1896_s4 + $0x20] sm:$0xff] %v974_v15  ;;  %977 = vst [vmem:[%s1898_s5] sm:$0xff] %v974_v15 }

</bundles_post_ra>
